<compile_context>
chip_gen: v7x
topology: tpu7x:2x2x1
jax: 0.10.0
libtpu: 0.0.40
codegen_flags: <defaults>
</compile_context>

<pallas_src>
import jax
import jax.numpy as jnp
from jax.experimental import pallas as pl
from jax.experimental.pallas import tpu as pltpu

EPS = 1e-5


def bottleneck_kernel(x_ref, ones2_ref, w1_ref, w2_ref, w3_ref,
                      g1_ref, b1_ref, g2_ref, b2_ref, g3_ref, b3_ref,
                      s1_ref, e1_ref, s3_ref, e3_ref,
                      o_ref):
    N, H, WCin = x_ref.shape          # x packed as (N, H, W*Cin)
    WCmid = w1_ref.shape[1]           # W * width
    WCout = w3_ref.shape[1]           # W * Cout
    width = s1_ref.shape[1]           # middle-stage channels
    W = WCmid // width
    NH = N * H
    inv_count = 1.0 / (N * H * W)
    cdt = w1_ref.dtype                # MXU operand dtype (bf16 perf / f32 parity)

    # packed identity / conv1 input: (N*H, W*Cin), lane-dense
    xp = x_ref[...].reshape(NH, WCin)
    ones2 = ones2_ref[...]            # (2, 2*NH) row-sum selector

    def bn_scale_shift(h, sel_ref, exp_ref, g_ref, b_ref):
        # Training-mode BN (biased var), one pass, stats entirely on the MXU:
        #   [cs; css]        = ones2 @ [h ; h*h]      (one dot, M=2)
        #   per-channel sums = [cs; css] @ sel        (one dot)
        #   packed scale/shift = [scale; shift] @ exp (one dot)
        # Stats math stays f32 even when conv operands are bf16.
        hs = jnp.concatenate([h, h * h], axis=0)                        # (2NH, WC)
        stats = jnp.dot(ones2, hs, preferred_element_type=jnp.float32)  # (2, WC)
        ch = jnp.dot(stats, sel_ref[...],
                     preferred_element_type=jnp.float32)                # (2, C)
        mean = ch[0:1] * inv_count
        var = ch[1:2] * inv_count - mean * mean
        scale = g_ref[...] * jax.lax.rsqrt(var + EPS)                   # (1, C)
        shift = b_ref[...] - mean * scale                               # (1, C)
        ss = jnp.concatenate([scale, shift], axis=0)                    # (2, C)
        ss_wc = jnp.dot(ss, exp_ref[...],
                        preferred_element_type=jnp.float32)             # (2, WC)
        return ss_wc[0:1], ss_wc[1:2]

    # ---- conv1 (1x1) + bn1 + relu, packed (NH, W*width) ----
    h1 = jnp.dot(xp.astype(cdt), w1_ref[...],
                 preferred_element_type=jnp.float32)
    sc, sh = bn_scale_shift(h1, s1_ref, e1_ref, g1_ref, b1_ref)
    a1 = jnp.maximum(h1 * sc + sh, 0.0)

    # ---- conv2 (3x3, stride=1, pad=1): 3 dy taps, dx folded into
    #      block-tridiagonal weights, tap sum folded into the MXU K dim ----
    row_y = jax.lax.broadcasted_iota(jnp.int32, (NH, WCmid), 0) % H
    valid_m1 = row_y >= 1        # dy = -1: source row y-1 exists
    valid_p1 = row_y < H - 1     # dy = +1: source row y+1 exists

    t_m1 = jnp.where(valid_m1, pltpu.roll(a1, shift=1, axis=0), 0.0)
    t_p1 = jnp.where(valid_p1, pltpu.roll(a1, shift=NH - 1, axis=0), 0.0)
    h_cat = jnp.concatenate([t_m1, a1, t_p1], axis=1).astype(cdt)  # (NH, 3*W*width)
    h2 = jnp.dot(h_cat, w2_ref[...], preferred_element_type=jnp.float32)
    sc, sh = bn_scale_shift(h2, s1_ref, e1_ref, g2_ref, b2_ref)
    a2 = jnp.maximum(h2 * sc + sh, 0.0)

    # ---- conv3 (1x1) + bn3 + residual add + relu, packed (NH, W*Cout) ----
    h3 = jnp.dot(a2.astype(cdt), w3_ref[...], preferred_element_type=jnp.float32)
    sc, sh = bn_scale_shift(h3, s3_ref, e3_ref, g3_ref, b3_ref)
    out = jnp.maximum(h3 * sc + sh + xp, 0.0)

    # lane-dense (last dim = W*Cout, multiple of 128) unmasked store
    o_ref[...] = out.reshape(N, H, WCout).astype(o_ref.dtype)


def pack_bottleneck_params(params, W, compute_dtype=jnp.bfloat16):
    """Precompute packed weights + BN helper matrices.

    Call ONCE per parameter set (hoisted out of the forward path) and reuse
    the result for every forward -- under jit this keeps the W-inflated
    weights from being re-materialized / re-DMA'd each call.
    """
    w1, g1, b1, w2, g2, b2, w3, g3, b3 = params
    Cin, width = w1.shape
    Cout = w3.shape[1]
    assert w2.shape == (3, 3, width, width), \
        "conv2 must be 3x3 with in==out==width (bn2 reuses the width sel/expand)"
    assert Cin == Cout, "downsample=None requires inplanes == planes*expansion"

    f32 = jnp.float32
    eye_w = jnp.eye(W, dtype=f32)
    # 1x1 convs -> block-diagonal packed matmuls over (x, c) lanes.
    w1_bd = jnp.kron(eye_w, w1.astype(f32))                  # (W*Cin,  W*width)
    w3_bd = jnp.kron(eye_w, w3.astype(f32))                  # (W*width, W*Cout)

    # conv2: fold the horizontal (dx) taps into one block-tridiagonal matrix
    # per dy; omitted off-diagonal blocks ARE the x-boundary zero padding.
    # Concatenate the 3 dy matrices along K so the whole 3x3 conv is a single
    # MXU dot with K = 3*W*width.
    def tri(w_ky):                                           # w_ky: (3, width, width)
        return sum(jnp.kron(jnp.eye(W, k=-(kx - 1), dtype=f32),
                            w_ky[kx].astype(f32)) for kx in range(3))
    w2_cat = jnp.concatenate([tri(w2[ky]) for ky in range(3)], axis=0)

    # BN helpers: per-channel selection (W*C -> C) and expansion (C -> W*C).
    s1 = jnp.tile(jnp.eye(width, dtype=f32), (W, 1))         # (W*width, width)
    s3 = jnp.tile(jnp.eye(Cout, dtype=f32), (W, 1))          # (W*Cout, Cout)

    cast = lambda a: a.astype(compute_dtype)
    return (cast(w1_bd), cast(w2_cat), cast(w3_bd),
            g1.astype(f32), b1.astype(f32), g2.astype(f32), b2.astype(f32),
            g3.astype(f32), b3.astype(f32),
            s1, s1.T, s3, s3.T)


def bottleneck_pallas_nhwc(x_nhwc, packed):
    """NHWC-native entry point (preferred: keep a network NHWC end-to-end)."""
    N, H, W, Cin = x_nhwc.shape
    WCout = packed[2].shape[1]
    Cout = WCout // W
    NH = N * H
    # Row-sum selector so [sum; sum_sq] come out of one MXU dot in the kernel.
    ones2 = jnp.kron(jnp.eye(2, dtype=jnp.float32),
                     jnp.ones((1, NH), jnp.float32))          # (2, 2*NH)
    x_packed = x_nhwc.reshape(N, H, W * Cin).astype(jnp.float32)
    vmem = pl.BlockSpec(memory_space=pltpu.MemorySpace.VMEM)
    out_packed = pl.pallas_call(
        bottleneck_kernel,
        out_shape=jax.ShapeDtypeStruct((N, H, W * Cout), jnp.float32),
        in_specs=[vmem] * (2 + len(packed)),
        out_specs=vmem,
    )(x_packed, ones2, *packed)
    return out_packed.reshape(N, H, W, Cout)


def bottleneck_pallas(x_nchw, packed):
    """PyTorch-convention entry point: NCHW in, NCHW out.

    The NCHW<->NHWC transposes cost extra HBM passes; in a chain of blocks
    prefer bottleneck_pallas_nhwc and stay NHWC end-to-end.
    """
    x_nhwc = jnp.transpose(x_nchw, (0, 2, 3, 1))
    out_nhwc = bottleneck_pallas_nhwc(x_nhwc, packed)
    return jnp.transpose(out_nhwc, (0, 3, 1, 2))


# ---- pure-JAX reference (for correctness check only) ----
def bottleneck_ref_nhwc(x, params):
    w1, g1, b1, w2, g2, b2, w3, g3, b3 = params

    def bn(h, gamma, beta):
        mean = jnp.mean(h, axis=(0, 1, 2), keepdims=True)
        var = jnp.mean((h - mean) ** 2, axis=(0, 1, 2), keepdims=True)
        return ((h - mean) * jax.lax.rsqrt(var + EPS)
                * gamma.reshape(1, 1, 1, -1) + beta.reshape(1, 1, 1, -1))

    dn = ('NHWC', 'HWIO', 'NHWC')
    h = jax.lax.conv_general_dilated(x, w1.reshape(1, 1, *w1.shape), (1, 1),
                                     'VALID', dimension_numbers=dn)
    h = jnp.maximum(bn(h, g1, b1), 0.0)
    h = jax.lax.conv_general_dilated(h, w2, (1, 1), 'SAME',
                                     dimension_numbers=dn)
    h = jnp.maximum(bn(h, g2, b2), 0.0)
    h = jax.lax.conv_general_dilated(h, w3.reshape(1, 1, *w3.shape), (1, 1),
                                     'VALID', dimension_numbers=dn)
    h = bn(h, g3, b3)
    return jnp.maximum(h + x, 0.0)


if __name__ == "__main__":
    # Shapes consistent with Bottleneck(inplanes=32, planes=8):
    #   width = planes = 8, out_channels = planes*4 = 32 = inplanes -> no downsample.
    # Packed lane dims: W*width = 128, W*Cout = 512 (lane-dense).
    N, H, W = 2, 16, 16
    planes = 8
    inplanes = planes * 4
    width = planes
    Cout = planes * 4

    key = jax.random.PRNGKey(0)
    ks = jax.random.split(key, 10)
    x_nchw = jax.random.normal(ks[0], (N, inplanes, H, W), jnp.float32)

    # deterministic synthetic parameters (conv weights have no bias)
    w1 = jax.random.normal(ks[1], (inplanes, width), jnp.float32) * 0.1      # conv1 1x1
    w2 = jax.random.normal(ks[2], (3, 3, width, width), jnp.float32) * 0.1   # conv2 3x3 (HWIO)
    w3 = jax.random.normal(ks[3], (width, Cout), jnp.float32) * 0.1          # conv3 1x1
    g1 = 1.0 + 0.1 * jax.random.normal(ks[4], (1, width), jnp.float32)
    b1 = 0.1 * jax.random.normal(ks[5], (1, width), jnp.float32)
    g2 = 1.0 + 0.1 * jax.random.normal(ks[6], (1, width), jnp.float32)
    b2 = 0.1 * jax.random.normal(ks[7], (1, width), jnp.float32)
    g3 = 1.0 + 0.1 * jax.random.normal(ks[8], (1, Cout), jnp.float32)
    b3 = 0.1 * jax.random.normal(ks[9], (1, Cout), jnp.float32)
    params = (w1, g1, b1, w2, g2, b2, w3, g3, b3)

    x_nhwc = jnp.transpose(x_nchw, (0, 2, 3, 1))
    ref = jnp.transpose(bottleneck_ref_nhwc(x_nhwc, params), (0, 3, 1, 2))

    # 1) f32 MXU operands: exact-parity correctness check.
    packed_f32 = pack_bottleneck_params(params, W, compute_dtype=jnp.float32)
    out_f32 = bottleneck_pallas(x_nchw, packed_f32)
    jax.block_until_ready(out_f32)
    assert out_f32.shape == (N, Cout, H, W)
    assert jnp.allclose(out_f32, ref, atol=2e-3, rtol=2e-3), "f32 mismatch vs reference"

    # 2) bf16 MXU operands (v5e/v6e/v7x perf mode): BN stats / normalization /
    #    residual stay f32, so only conv matmul rounding differs.
    packed_bf16 = pack_bottleneck_params(params, W, compute_dtype=jnp.bfloat16)
    out_bf16 = bottleneck_pallas(x_nchw, packed_bf16)
    jax.block_until_ready(out_bf16)
    max_err = float(jnp.max(jnp.abs(out_bf16 - ref)))
    assert max_err < 0.3, f"bf16 mode drifted too far from reference: {max_err}"

    print("KERNEL_OK")
</pallas_src>

<mosaic_0001>
module attributes {stable_mosaic.version = 11 : i64} {
  func.func @bottleneck_kernel(%arg0: memref<2x16x512xf32, #tpu.memory_space<vmem>>, %arg1: memref<2x64xf32, #tpu.memory_space<vmem>>, %arg2: memref<512x128xf32, #tpu.memory_space<vmem>>, %arg3: memref<384x128xf32, #tpu.memory_space<vmem>>, %arg4: memref<128x512xf32, #tpu.memory_space<vmem>>, %arg5: memref<1x8xf32, #tpu.memory_space<vmem>>, %arg6: memref<1x8xf32, #tpu.memory_space<vmem>>, %arg7: memref<1x8xf32, #tpu.memory_space<vmem>>, %arg8: memref<1x8xf32, #tpu.memory_space<vmem>>, %arg9: memref<1x32xf32, #tpu.memory_space<vmem>>, %arg10: memref<1x32xf32, #tpu.memory_space<vmem>>, %arg11: memref<128x8xf32, #tpu.memory_space<vmem>>, %arg12: memref<8x128xf32, #tpu.memory_space<vmem>>, %arg13: memref<512x32xf32, #tpu.memory_space<vmem>>, %arg14: memref<32x512xf32, #tpu.memory_space<vmem>>, %arg15: memref<2x16x512xf32, #tpu.memory_space<vmem>>) attributes {dimension_semantics = [], scalar_prefetch = 0 : i64, scratch_operands = 0 : i64, tpu.core_type = #tpu.core_type<tc>} {
    %c0 = arith.constant 0 : index
    %c0_0 = arith.constant 0 : index
    %c0_1 = arith.constant 0 : index
    %0 = vector.load %arg0[%c0, %c0_0, %c0_1] : memref<2x16x512xf32, #tpu.memory_space<vmem>>, vector<2x16x512xf32>
    %1 = vector.shape_cast %0 : vector<2x16x512xf32> to vector<32x512xf32>
    %c0_2 = arith.constant 0 : index
    %c0_3 = arith.constant 0 : index
    %2 = vector.load %arg1[%c0_2, %c0_3] : memref<2x64xf32, #tpu.memory_space<vmem>>, vector<2x64xf32>
    %c0_4 = arith.constant 0 : index
    %c0_5 = arith.constant 0 : index
    %3 = vector.load %arg2[%c0_4, %c0_5] : memref<512x128xf32, #tpu.memory_space<vmem>>, vector<512x128xf32>
    %cst = arith.constant dense<0.000000e+00> : vector<32x128xf32>
    %4 = tpu.matmul %1, %3, %cst {dimension_numbers = #tpu.dot_dimension_numbers<[1], [0], [0], [1], [0, 0, 1, 1], [], []>} : vector<32x512xf32>, vector<512x128xf32>, vector<32x128xf32> -> vector<32x128xf32>
    %5 = arith.mulf %4, %4 : vector<32x128xf32>
    %6 = tpu.concatenate %4, %5 in 0 : vector<32x128xf32>, vector<32x128xf32> -> vector<64x128xf32>
    %cst_6 = arith.constant dense<0.000000e+00> : vector<2x128xf32>
    %7 = tpu.matmul %2, %6, %cst_6 {dimension_numbers = #tpu.dot_dimension_numbers<[1], [0], [0], [1], [0, 0, 1, 1], [], []>} : vector<2x64xf32>, vector<64x128xf32>, vector<2x128xf32> -> vector<2x128xf32>
    %c0_7 = arith.constant 0 : index
    %c0_8 = arith.constant 0 : index
    %8 = vector.load %arg11[%c0_7, %c0_8] : memref<128x8xf32, #tpu.memory_space<vmem>>, vector<128x8xf32>
    %cst_9 = arith.constant dense<0.000000e+00> : vector<2x8xf32>
    %9 = tpu.matmul %7, %8, %cst_9 {dimension_numbers = #tpu.dot_dimension_numbers<[1], [0], [0], [1], [0, 0, 1, 1], [], []>} : vector<2x128xf32>, vector<128x8xf32>, vector<2x8xf32> -> vector<2x8xf32>
    %10 = vector.extract_strided_slice %9 {offsets = [0, 0], sizes = [1, 8], strides = [1, 1]} : vector<2x8xf32> to vector<1x8xf32>
    %cst_10 = arith.constant 0.001953125 : f32
    %11 = vector.broadcast %cst_10 : f32 to vector<1x8xf32>
    %12 = arith.mulf %10, %11 : vector<1x8xf32>
    %13 = vector.extract_strided_slice %9 {offsets = [1, 0], sizes = [1, 8], strides = [1, 1]} : vector<2x8xf32> to vector<1x8xf32>
    %cst_11 = arith.constant 0.001953125 : f32
    %14 = vector.broadcast %cst_11 : f32 to vector<1x8xf32>
    %15 = arith.mulf %13, %14 : vector<1x8xf32>
    %16 = arith.mulf %12, %12 : vector<1x8xf32>
    %17 = arith.subf %15, %16 : vector<1x8xf32>
    %c0_12 = arith.constant 0 : index
    %c0_13 = arith.constant 0 : index
    %18 = vector.load %arg5[%c0_12, %c0_13] : memref<1x8xf32, #tpu.memory_space<vmem>>, vector<1x8xf32>
    %cst_14 = arith.constant 9.99999974E-6 : f32
    %19 = vector.broadcast %cst_14 : f32 to vector<1x8xf32>
    %20 = arith.addf %17, %19 : vector<1x8xf32>
    %21 = math.rsqrt %20 : vector<1x8xf32>
    %22 = arith.mulf %18, %21 : vector<1x8xf32>
    %c0_15 = arith.constant 0 : index
    %c0_16 = arith.constant 0 : index
    %23 = vector.load %arg6[%c0_15, %c0_16] : memref<1x8xf32, #tpu.memory_space<vmem>>, vector<1x8xf32>
    %24 = arith.mulf %12, %22 : vector<1x8xf32>
    %25 = arith.subf %23, %24 : vector<1x8xf32>
    %26 = tpu.concatenate %22, %25 in 0 : vector<1x8xf32>, vector<1x8xf32> -> vector<2x8xf32>
    %c0_17 = arith.constant 0 : index
    %c0_18 = arith.constant 0 : index
    %27 = vector.load %arg12[%c0_17, %c0_18] : memref<8x128xf32, #tpu.memory_space<vmem>>, vector<8x128xf32>
    %cst_19 = arith.constant dense<0.000000e+00> : vector<2x128xf32>
    %28 = tpu.matmul %26, %27, %cst_19 {dimension_numbers = #tpu.dot_dimension_numbers<[1], [0], [0], [1], [0, 0, 1, 1], [], []>} : vector<2x8xf32>, vector<8x128xf32>, vector<2x128xf32> -> vector<2x128xf32>
    %29 = vector.extract_strided_slice %28 {offsets = [0, 0], sizes = [1, 128], strides = [1, 1]} : vector<2x128xf32> to vector<1x128xf32>
    %30 = vector.extract_strided_slice %28 {offsets = [1, 0], sizes = [1, 128], strides = [1, 1]} : vector<2x128xf32> to vector<1x128xf32>
    %31 = vector.broadcast %29 : vector<1x128xf32> to vector<32x128xf32>
    %32 = arith.mulf %4, %31 : vector<32x128xf32>
    %33 = vector.broadcast %30 : vector<1x128xf32> to vector<32x128xf32>
    %34 = arith.addf %32, %33 : vector<32x128xf32>
    %cst_20 = arith.constant 0.000000e+00 : f32
    %35 = vector.broadcast %cst_20 : f32 to vector<32x128xf32>
    %36 = arith.maximumf %34, %35 : vector<32x128xf32>
    %37 = tpu.iota {dimensions = array<i32: 0>} : vector<32x128xi32>
    %c16_i32 = arith.constant 16 : i32
    %c0_i32 = arith.constant 0 : i32
    %38 = arith.cmpi eq, %c16_i32, %c0_i32 : i32
    %c1_i32 = arith.constant 1 : i32
    %39 = arith.select %38, %c1_i32, %c16_i32 : i32
    %40 = vector.broadcast %39 : i32 to vector<32x128xi32>
    %41 = arith.remsi %37, %40 : vector<32x128xi32>
    %c0_i32_21 = arith.constant 0 : i32
    %42 = vector.broadcast %c0_i32_21 : i32 to vector<32x128xi32>
    %43 = arith.cmpi ne, %41, %42 : vector<32x128xi32>
    %c0_i32_22 = arith.constant 0 : i32
    %44 = vector.broadcast %c0_i32_22 : i32 to vector<32x128xi32>
    %45 = arith.cmpi slt, %41, %44 : vector<32x128xi32>
    %c0_i32_23 = arith.constant 0 : i32
    %46 = arith.cmpi slt, %39, %c0_i32_23 : i32
    %47 = vector.broadcast %46 : i1 to vector<32x128xi1>
    %48 = vector.broadcast %47 : vector<32x128xi1> to vector<32x128xi1>
    %49 = arith.xori %45, %48 : vector<32x128xi1>
    %50 = arith.andi %49, %43 : vector<32x128xi1>
    %51 = vector.broadcast %39 : i32 to vector<32x128xi32>
    %52 = arith.addi %41, %51 : vector<32x128xi32>
    %53 = arith.select %50, %52, %41 : vector<32x128xi1>, vector<32x128xi32>
    %c1_i32_24 = arith.constant 1 : i32
    %54 = vector.broadcast %c1_i32_24 : i32 to vector<32x128xi32>
    %55 = arith.cmpi sge, %53, %54 : vector<32x128xi32>
    %c15_i32 = arith.constant 15 : i32
    %56 = vector.broadcast %c15_i32 : i32 to vector<32x128xi32>
    %57 = arith.cmpi slt, %53, %56 : vector<32x128xi32>
    %c1_i32_25 = arith.constant 1 : i32
    %58 = tpu.dynamic_rotate %36 by %c1_i32_25 dim 0 : vector<32x128xf32>, i32 -> vector<32x128xf32>
    %cst_26 = arith.constant 0.000000e+00 : f32
    %59 = vector.broadcast %cst_26 : f32 to vector<32x128xf32>
    %60 = arith.select %55, %58, %59 : vector<32x128xi1>, vector<32x128xf32>
    %c31_i32 = arith.constant 31 : i32
    %61 = tpu.dynamic_rotate %36 by %c31_i32 dim 0 : vector<32x128xf32>, i32 -> vector<32x128xf32>
    %cst_27 = arith.constant 0.000000e+00 : f32
    %62 = vector.broadcast %cst_27 : f32 to vector<32x128xf32>
    %63 = arith.select %57, %61, %62 : vector<32x128xi1>, vector<32x128xf32>
    %64 = tpu.concatenate %60, %36, %63 in 1 : vector<32x128xf32>, vector<32x128xf32>, vector<32x128xf32> -> vector<32x384xf32>
    %c0_28 = arith.constant 0 : index
    %c0_29 = arith.constant 0 : index
    %65 = vector.load %arg3[%c0_28, %c0_29] : memref<384x128xf32, #tpu.memory_space<vmem>>, vector<384x128xf32>
    %cst_30 = arith.constant dense<0.000000e+00> : vector<32x128xf32>
    %66 = tpu.matmul %64, %65, %cst_30 {dimension_numbers = #tpu.dot_dimension_numbers<[1], [0], [0], [1], [0, 0, 1, 1], [], []>} : vector<32x384xf32>, vector<384x128xf32>, vector<32x128xf32> -> vector<32x128xf32>
    %67 = arith.mulf %66, %66 : vector<32x128xf32>
    %68 = tpu.concatenate %66, %67 in 0 : vector<32x128xf32>, vector<32x128xf32> -> vector<64x128xf32>
    %cst_31 = arith.constant dense<0.000000e+00> : vector<2x128xf32>
    %69 = tpu.matmul %2, %68, %cst_31 {dimension_numbers = #tpu.dot_dimension_numbers<[1], [0], [0], [1], [0, 0, 1, 1], [], []>} : vector<2x64xf32>, vector<64x128xf32>, vector<2x128xf32> -> vector<2x128xf32>
    %c0_32 = arith.constant 0 : index
    %c0_33 = arith.constant 0 : index
    %70 = vector.load %arg11[%c0_32, %c0_33] : memref<128x8xf32, #tpu.memory_space<vmem>>, vector<128x8xf32>
    %cst_34 = arith.constant dense<0.000000e+00> : vector<2x8xf32>
    %71 = tpu.matmul %69, %70, %cst_34 {dimension_numbers = #tpu.dot_dimension_numbers<[1], [0], [0], [1], [0, 0, 1, 1], [], []>} : vector<2x128xf32>, vector<128x8xf32>, vector<2x8xf32> -> vector<2x8xf32>
    %72 = vector.extract_strided_slice %71 {offsets = [0, 0], sizes = [1, 8], strides = [1, 1]} : vector<2x8xf32> to vector<1x8xf32>
    %cst_35 = arith.constant 0.001953125 : f32
    %73 = vector.broadcast %cst_35 : f32 to vector<1x8xf32>
    %74 = arith.mulf %72, %73 : vector<1x8xf32>
    %75 = vector.extract_strided_slice %71 {offsets = [1, 0], sizes = [1, 8], strides = [1, 1]} : vector<2x8xf32> to vector<1x8xf32>
    %cst_36 = arith.constant 0.001953125 : f32
    %76 = vector.broadcast %cst_36 : f32 to vector<1x8xf32>
    %77 = arith.mulf %75, %76 : vector<1x8xf32>
    %78 = arith.mulf %74, %74 : vector<1x8xf32>
    %79 = arith.subf %77, %78 : vector<1x8xf32>
    %c0_37 = arith.constant 0 : index
    %c0_38 = arith.constant 0 : index
    %80 = vector.load %arg7[%c0_37, %c0_38] : memref<1x8xf32, #tpu.memory_space<vmem>>, vector<1x8xf32>
    %cst_39 = arith.constant 9.99999974E-6 : f32
    %81 = vector.broadcast %cst_39 : f32 to vector<1x8xf32>
    %82 = arith.addf %79, %81 : vector<1x8xf32>
    %83 = math.rsqrt %82 : vector<1x8xf32>
    %84 = arith.mulf %80, %83 : vector<1x8xf32>
    %c0_40 = arith.constant 0 : index
    %c0_41 = arith.constant 0 : index
    %85 = vector.load %arg8[%c0_40, %c0_41] : memref<1x8xf32, #tpu.memory_space<vmem>>, vector<1x8xf32>
    %86 = arith.mulf %74, %84 : vector<1x8xf32>
    %87 = arith.subf %85, %86 : vector<1x8xf32>
    %88 = tpu.concatenate %84, %87 in 0 : vector<1x8xf32>, vector<1x8xf32> -> vector<2x8xf32>
    %c0_42 = arith.constant 0 : index
    %c0_43 = arith.constant 0 : index
    %89 = vector.load %arg12[%c0_42, %c0_43] : memref<8x128xf32, #tpu.memory_space<vmem>>, vector<8x128xf32>
    %cst_44 = arith.constant dense<0.000000e+00> : vector<2x128xf32>
    %90 = tpu.matmul %88, %89, %cst_44 {dimension_numbers = #tpu.dot_dimension_numbers<[1], [0], [0], [1], [0, 0, 1, 1], [], []>} : vector<2x8xf32>, vector<8x128xf32>, vector<2x128xf32> -> vector<2x128xf32>
    %91 = vector.extract_strided_slice %90 {offsets = [0, 0], sizes = [1, 128], strides = [1, 1]} : vector<2x128xf32> to vector<1x128xf32>
    %92 = vector.extract_strided_slice %90 {offsets = [1, 0], sizes = [1, 128], strides = [1, 1]} : vector<2x128xf32> to vector<1x128xf32>
    %93 = vector.broadcast %91 : vector<1x128xf32> to vector<32x128xf32>
    %94 = arith.mulf %66, %93 : vector<32x128xf32>
    %95 = vector.broadcast %92 : vector<1x128xf32> to vector<32x128xf32>
    %96 = arith.addf %94, %95 : vector<32x128xf32>
    %cst_45 = arith.constant 0.000000e+00 : f32
    %97 = vector.broadcast %cst_45 : f32 to vector<32x128xf32>
    %98 = arith.maximumf %96, %97 : vector<32x128xf32>
    %c0_46 = arith.constant 0 : index
    %c0_47 = arith.constant 0 : index
    %99 = vector.load %arg4[%c0_46, %c0_47] : memref<128x512xf32, #tpu.memory_space<vmem>>, vector<128x512xf32>
    %cst_48 = arith.constant dense<0.000000e+00> : vector<32x512xf32>
    %100 = tpu.matmul %98, %99, %cst_48 {dimension_numbers = #tpu.dot_dimension_numbers<[1], [0], [0], [1], [0, 0, 1, 1], [], []>} : vector<32x128xf32>, vector<128x512xf32>, vector<32x512xf32> -> vector<32x512xf32>
    %101 = arith.mulf %100, %100 : vector<32x512xf32>
    %102 = tpu.concatenate %100, %101 in 0 : vector<32x512xf32>, vector<32x512xf32> -> vector<64x512xf32>
    %cst_49 = arith.constant dense<0.000000e+00> : vector<2x512xf32>
    %103 = tpu.matmul %2, %102, %cst_49 {dimension_numbers = #tpu.dot_dimension_numbers<[1], [0], [0], [1], [0, 0, 1, 1], [], []>} : vector<2x64xf32>, vector<64x512xf32>, vector<2x512xf32> -> vector<2x512xf32>
    %c0_50 = arith.constant 0 : index
    %c0_51 = arith.constant 0 : index
    %104 = vector.load %arg13[%c0_50, %c0_51] : memref<512x32xf32, #tpu.memory_space<vmem>>, vector<512x32xf32>
    %cst_52 = arith.constant dense<0.000000e+00> : vector<2x32xf32>
    %105 = tpu.matmul %103, %104, %cst_52 {dimension_numbers = #tpu.dot_dimension_numbers<[1], [0], [0], [1], [0, 0, 1, 1], [], []>} : vector<2x512xf32>, vector<512x32xf32>, vector<2x32xf32> -> vector<2x32xf32>
    %106 = vector.extract_strided_slice %105 {offsets = [0, 0], sizes = [1, 32], strides = [1, 1]} : vector<2x32xf32> to vector<1x32xf32>
    %cst_53 = arith.constant 0.001953125 : f32
    %107 = vector.broadcast %cst_53 : f32 to vector<1x32xf32>
    %108 = arith.mulf %106, %107 : vector<1x32xf32>
    %109 = vector.extract_strided_slice %105 {offsets = [1, 0], sizes = [1, 32], strides = [1, 1]} : vector<2x32xf32> to vector<1x32xf32>
    %cst_54 = arith.constant 0.001953125 : f32
    %110 = vector.broadcast %cst_54 : f32 to vector<1x32xf32>
    %111 = arith.mulf %109, %110 : vector<1x32xf32>
    %112 = arith.mulf %108, %108 : vector<1x32xf32>
    %113 = arith.subf %111, %112 : vector<1x32xf32>
    %c0_55 = arith.constant 0 : index
    %c0_56 = arith.constant 0 : index
    %114 = vector.load %arg9[%c0_55, %c0_56] : memref<1x32xf32, #tpu.memory_space<vmem>>, vector<1x32xf32>
    %cst_57 = arith.constant 9.99999974E-6 : f32
    %115 = vector.broadcast %cst_57 : f32 to vector<1x32xf32>
    %116 = arith.addf %113, %115 : vector<1x32xf32>
    %117 = math.rsqrt %116 : vector<1x32xf32>
    %118 = arith.mulf %114, %117 : vector<1x32xf32>
    %c0_58 = arith.constant 0 : index
    %c0_59 = arith.constant 0 : index
    %119 = vector.load %arg10[%c0_58, %c0_59] : memref<1x32xf32, #tpu.memory_space<vmem>>, vector<1x32xf32>
    %120 = arith.mulf %108, %118 : vector<1x32xf32>
    %121 = arith.subf %119, %120 : vector<1x32xf32>
    %122 = tpu.concatenate %118, %121 in 0 : vector<1x32xf32>, vector<1x32xf32> -> vector<2x32xf32>
    %c0_60 = arith.constant 0 : index
    %c0_61 = arith.constant 0 : index
    %123 = vector.load %arg14[%c0_60, %c0_61] : memref<32x512xf32, #tpu.memory_space<vmem>>, vector<32x512xf32>
    %cst_62 = arith.constant dense<0.000000e+00> : vector<2x512xf32>
    %124 = tpu.matmul %122, %123, %cst_62 {dimension_numbers = #tpu.dot_dimension_numbers<[1], [0], [0], [1], [0, 0, 1, 1], [], []>} : vector<2x32xf32>, vector<32x512xf32>, vector<2x512xf32> -> vector<2x512xf32>
    %125 = vector.extract_strided_slice %124 {offsets = [0, 0], sizes = [1, 512], strides = [1, 1]} : vector<2x512xf32> to vector<1x512xf32>
    %126 = vector.extract_strided_slice %124 {offsets = [1, 0], sizes = [1, 512], strides = [1, 1]} : vector<2x512xf32> to vector<1x512xf32>
    %127 = vector.broadcast %125 : vector<1x512xf32> to vector<32x512xf32>
    %128 = arith.mulf %100, %127 : vector<32x512xf32>
    %129 = vector.broadcast %126 : vector<1x512xf32> to vector<32x512xf32>
    %130 = arith.addf %128, %129 : vector<32x512xf32>
    %131 = arith.addf %130, %1 : vector<32x512xf32>
    %cst_63 = arith.constant 0.000000e+00 : f32
    %132 = vector.broadcast %cst_63 : f32 to vector<32x512xf32>
    %133 = arith.maximumf %131, %132 : vector<32x512xf32>
    %134 = vector.shape_cast %133 : vector<32x512xf32> to vector<2x16x512xf32>
    %c0_64 = arith.constant 0 : index
    %c0_65 = arith.constant 0 : index
    %c0_66 = arith.constant 0 : index
    %135 = vector.load %arg15[%c0_64, %c0_65, %c0_66] : memref<2x16x512xf32, #tpu.memory_space<vmem>>, vector<2x16x512xf32>
    tpu.vector_store %arg15[%c0_64, %c0_65, %c0_66], %134 {strides = array<i32>} : memref<2x16x512xf32, #tpu.memory_space<vmem>>, vector<2x16x512xf32>,
    return
  }
}

</mosaic_0001>

<bundles_post_ra>
// kernel: tpu_custom_call.1
= control target key start
LH: loop header
LB: loop body
LE: loop exit
PB: predicated region body
PF: predicated region fallthrough
CT: control target
= control target key end

     0   :  { %20 = vsyncpa [#allocation3], 0  ;;  %s4120_s0 = inlined_call_operand.vmem [shape: f32[2,16,512], index: 0, kind: input, shape index: {}]   ;;  %s4121_s1 = inlined_call_operand.vmem [shape: f32[2,64], index: 1, kind: input, shape index: {}]   ;;  %s4122_s2 = inlined_call_operand.vmem [shape: f32[512,128], index: 2, kind: input, shape index: {}]   ;;  %s4123_s3 = inlined_call_operand.hbm [shape: f32[384,128], index: 3, kind: input, shape index: {}]   ;;  %s4124_s4 = inlined_call_operand.hbm [shape: f32[128,512], index: 4, kind: input, shape index: {}]   ;;  %s4125_s5 = inlined_call_operand.vmem [shape: f32[1,8], index: 5, kind: input, shape index: {}]   ;;  %s4126_s6 = inlined_call_operand.vmem [shape: f32[1,8], index: 6, kind: input, shape index: {}]   ;;  %s4127_s7 = inlined_call_operand.vmem [shape: f32[1,8], index: 7, kind: input, shape index: {}]   ;;  %s4128_s8 = inlined_call_operand.vmem [shape: f32[1,8], index: 8, kind: input, shape index: {}]   ;;  %s4129_s9 = inlined_call_operand.vmem [shape: f32[1,32], index: 9, kind: input, shape index: {}]   ;;  %s4130_s10 = inlined_call_operand.vmem [shape: f32[1,32], index: 10, kind: input, shape index: {}]   ;;  %s4131_s11 = inlined_call_operand.vmem [shape: f32[128,8], index: 11, kind: input, shape index: {}]   ;;  %s4132_s12 = inlined_call_operand.vmem [shape: f32[8,128], index: 12, kind: input, shape index: {}]   ;;  %s4133_s13 = inlined_call_operand.vmem [shape: f32[512,32], index: 13, kind: input, shape index: {}]   ;;  %s4134_s14 = inlined_call_operand.hbm [shape: f32[32,512], index: 14, kind: input, shape index: {}]   ;;  %s4135_s15 = inlined_call_operand.hbm [shape: f32[2,16,512], index: 15, kind: output, shape index: {}]  }
   0x1   :  { %21 = vsyncpa [#allocation6], 0 }
   0x2   :  { %22 = vsyncpa [#allocation4], 0  ;;  %s3103_s18 = smov [#allocation5]   ;;  %s3009_s22 = scalar_lea.hbm %s4124_s4, 8192 }
   0x3   :  { %s46_s19 = sshll.u32 %s3103_s18, 4  ;;  %p3010_p0 = scmp.ne.s32.totalorder %s4124_s4, %s3009_s22  ;;  %s47_s19 = int_to_ptr.vmem [resolvable:$true] %s46_s19 }
   0x4   :  { %p3013_p1 = scmp.lt.u32.totalorder %s3009_s22, %s4124_s4 }
   0x6   :  { %p3015_p2 = pnand %p3013_p1, %p3010_p0 }
   0x8   :  { %3018 = shalt.err (!%p3015_p2)
}
   0x9   :  { %s3019_s27 = scalar_lea.vmem %s47_s19, 8192  ;;  %p3024_p4 = scmp.lt.s32.totalorder %s47_s19, %s47_s19 }
   0xa   :  { %p3020_p3 = scmp.ne.s32.totalorder %s47_s19, %s3019_s27  ;;  %p3025_p5 = scmp.lt.s32.totalorder %s3019_s27, %s3019_s27 }
   0xc   :  { %p3026_p6 = por %p3025_p5, %p3024_p4 }
   0xe   :  { %p3027_p7 = pnand %p3026_p6, %p3020_p3 }
  0x10   :  { %3030 = shalt.err (!%p3027_p7)
}
  0x11   :  { %s4136_s28 = smov 512   ;;  %s3105_s29 = smov 32  }
  0x12   :  { %52 = dma.hbm_to_vmem [thread:$0]  %s4124_s4, 8192, %s47_s19, [#allocation6], %s4136_s28, %s4136_s28, %s3105_s29  }
  0x13   :  { %s3106_s17 = smov [#allocation2]   ;;  %s3031_s22 = scalar_lea.hbm %s4123_s3, 6144 }
  0x14   :  { %s34_s18 = sshll.u32 %s3106_s17, 4  ;;  %p3032_p8 = scmp.ne.s32.totalorder %s4123_s3, %s3031_s22  ;;  %s35_s18 = int_to_ptr.vmem [resolvable:$true] %s34_s18 }
  0x15   :  { %p3035_p9 = scmp.lt.u32.totalorder %s3031_s22, %s4123_s3 }
  0x17   :  { %p3037_p10 = pnand %p3035_p9, %p3032_p8 }
  0x19   :  { %3040 = shalt.err (!%p3037_p10)
}
  0x1a   :  { %s3041_s27 = scalar_lea.vmem %s35_s18, 6144  ;;  %p3046_p12 = scmp.lt.s32.totalorder %s35_s18, %s35_s18 }
  0x1b   :  { %p3042_p11 = scmp.ne.s32.totalorder %s35_s18, %s3041_s27  ;;  %p3047_p13 = scmp.lt.s32.totalorder %s3041_s27, %s3041_s27 }
  0x1d   :  { %p3048_p0 = por %p3047_p13, %p3046_p12 }
  0x1f   :  { %p3049_p1 = pnand %p3048_p0, %p3042_p11 }
  0x21   :  { %3052 = shalt.err (!%p3049_p1)
}
  0x22   :  { %s3107_s4 = smov 128   ;;  %s3108_s19 = smov 8  }
  0x23   :  { %40 = dma.hbm_to_vmem [thread:$0]  %s4123_s3, 6144, %s35_s18, [#allocation3], %s3107_s4, %s3107_s4, %s3108_s19  }
  0x24   :  { %s3109_s17 = smov [#allocation7]   ;;  %s3053_s23 = scalar_lea.hbm %s4134_s14, 2048 }
  0x25   :  { %s76_s20 = sshll.u32 %s3109_s17, 4  ;;  %p3054_p2 = scmp.ne.s32.totalorder %s4134_s14, %s3053_s23  ;;  %s77_s20 = int_to_ptr.vmem [resolvable:$true] %s76_s20 }
  0x26   :  { %p3057_p3 = scmp.lt.u32.totalorder %s3053_s23, %s4134_s14 }
  0x28   :  { %p3059_p4 = pnand %p3057_p3, %p3054_p2 }
  0x2a   :  { %3062 = shalt.err (!%p3059_p4)
}
  0x2b   :  { %s3063_s28 = scalar_lea.vmem %s77_s20, 2048  ;;  %p3068_p6 = scmp.lt.s32.totalorder %s77_s20, %s77_s20 }
  0x2c   :  { %p3064_p5 = scmp.ne.s32.totalorder %s77_s20, %s3063_s28  ;;  %p3069_p7 = scmp.lt.s32.totalorder %s3063_s28, %s3063_s28 }
  0x2e   :  { %p3070_p8 = por %p3069_p7, %p3068_p6 }
  0x30   :  { %p3071_p9 = pnand %p3070_p8, %p3064_p5 }
  0x32   :  { %3074 = shalt.err (!%p3071_p9)
}
  0x33   :  { %s4138_s3 = smov 512  }
  0x34   :  { %82 = dma.hbm_to_vmem [thread:$0]  %s4134_s14, 2048, %s77_s20, [#allocation6], %s4138_s3, %s4138_s3, %s3105_s29  }
  0x35   :  { %3097 = dma.done.wait [#allocation3], 6144  }
  0x36   :  { %3098 = vsyncadd [#allocation3], 4294961152 }
  0x37   :  { %3099 = dma.done.wait [#allocation6], 10240  }
  0x38   :  { %3100 = vsyncadd [#allocation6], 4294957056  ;;  %v125_v0 = vld [vmem:[%s4122_s2 + $0x80] sm:$0xff]  ;;  %v126_v1 = vld [vmem:[%s4122_s2 + $0x88] sm:$0xff]  ;;  %vm3111_vm0 = vmmov 0   ;;  %vm347_vm1 = vcmask 523264  }
  0x39   :  { %v157_v2 = vld [vmem:[%s4122_s2 + $0x180] sm:$0xff]  ;;  %v2598_v3 = vpack.c.bf16 %v126_v1, %v125_v0  ;;  %v158_v4 = vld [vmem:[%s4122_s2 + $0x188] sm:$0xff]  ;;  %v127_v11 = vld [vmem:[%s4122_s2 + $0x90] sm:$0xff]  ;;  %vm543_vm2 = vcmask 1040384   ;;  %vm546_vm3 = vcmask 64512   ;;  %vm1876_vm10 = vcmask 261120  }
  0x3a   :  { %v109_v5 = vld [vmem:[%s4122_s2] sm:$0xff]  ;;  %v110_v6 = vld [vmem:[%s4122_s2 + $0x8] sm:$0xff]  ;;  %v2630_v7 = vpack.c.bf16 %v158_v4, %v157_v2  ;;  %v128_v13 = vld [vmem:[%s4122_s2 + $0x98] sm:$0xff]  ;;  %s3114_s26 = smov [#allocation8]  }
  0x3b   :  { %v2600_v8 = vpack.c.bf16 %v110_v6, %v109_v5  ;;  %v141_v9 = vld [vmem:[%s4122_s2 + $0x100] sm:$0xff]  ;;  %v142_v10 = vld [vmem:[%s4122_s2 + $0x108] sm:$0xff]  ;;  %2599 = vmatprep.subr.bf16.mxu0 %v2598_v3  ;;  %v159_v14 = vld [vmem:[%s4122_s2 + $0x190] sm:$0xff]  ;;  %v2602_v16 = vpack.c.bf16 %v128_v13, %v127_v11  ;;  %s2139_s27 = sshll.u32 %s3114_s26, 4  ;;  %s2140_s27 = int_to_ptr.vmem [resolvable:$true] %s2139_s27 }
  0x3c   :  { %v2632_v12 = vpack.c.bf16 %v142_v10, %v141_v9  ;;  %v160_v15 = vld [vmem:[%s4122_s2 + $0x198] sm:$0xff]  ;;  %2631 = vmatprep.subr.bf16.mxu1 %v2630_v7  ;;  %v111_v18 = vld [vmem:[%s4122_s2 + $0x10] sm:$0xff]  ;;  %v129_v23 = vld [vmem:[%s4122_s2 + $0xa0] sm:$0xff]  ;;  %p3080_p11 = scmp.lt.s32.totalorder %s2140_s27, %s2140_s27 }
  0x3d   :  { %2601 = vmatpush3.bf16.msra.mxu0 %v2600_v8  ;;  %v2634_v17 = vpack.c.bf16 %v160_v15, %v159_v14  ;;  %v112_v19 = vld [vmem:[%s4122_s2 + $0x18] sm:$0xff]  ;;  %v143_v20 = vld [vmem:[%s4122_s2 + $0x110] sm:$0xff]  ;;  %v130_v24 = vld [vmem:[%s4122_s2 + $0xa8] sm:$0xff] }
  0x3e   :  { %2633 = vmatpush3.bf16.msra.mxu1 %v2632_v12  ;;  %v2604_v21 = vpack.c.bf16 %v112_v19, %v111_v18  ;;  %v144_v22 = vld [vmem:[%s4122_s2 + $0x118] sm:$0xff]  ;;  %2603 = vmatprep.subr.bf16.mxu0 %v2602_v16  ;;  %v2606_v26 = vpack.c.bf16 %v130_v24, %v129_v23  ;;  %v161_v27 = vld [vmem:[%s4122_s2 + $0x1a0] sm:$0xff]  ;;  %v162_v28 = vld [vmem:[%s4122_s2 + $0x1a8] sm:$0xff] }
  0x3f   :  { %2635 = vmatprep.subr.bf16.mxu1 %v2634_v17  ;;  %v2636_v25 = vpack.c.bf16 %v144_v22, %v143_v20  ;;  %v113_v29 = vld [vmem:[%s4122_s2 + $0x20] sm:$0xff]  ;;  %v2638_v30 = vpack.c.bf16 %v162_v28, %v161_v27  ;;  %v114_v31 = vld [vmem:[%s4122_s2 + $0x28] sm:$0xff]  ;;  %v131_v35 = vld [vmem:[%s4122_s2 + $0xb0] sm:$0xff] }
  0x40   :  { %v145_v32 = vld [vmem:[%s4122_s2 + $0x120] sm:$0xff]  ;;  %v146_v33 = vld [vmem:[%s4122_s2 + $0x128] sm:$0xff]  ;;  %v2608_v34 = vpack.c.bf16 %v114_v31, %v113_v29  ;;  %v132_v36 = vld [vmem:[%s4122_s2 + $0xb8] sm:$0xff] }
  0x41   :  { %2605 = vmatpush3.bf16.msra.mxu0 %v2604_v21  ;;  %v163_v37 = vld [vmem:[%s4122_s2 + $0x1b0] sm:$0xff]  ;;  %v2640_v38 = vpack.c.bf16 %v146_v33, %v145_v32  ;;  %v2610_v39 = vpack.c.bf16 %v132_v36, %v131_v35  ;;  %v164_v40 = vld [vmem:[%s4122_s2 + $0x1b8] sm:$0xff]  ;;  %v133_v46 = vld [vmem:[%s4122_s2 + $0xc0] sm:$0xff] }
  0x42   :  { %2637 = vmatpush3.bf16.msra.mxu1 %v2636_v25  ;;  %2607 = vmatprep.subr.bf16.mxu0 %v2606_v26  ;;  %v115_v41 = vld [vmem:[%s4122_s2 + $0x30] sm:$0xff]  ;;  %v116_v42 = vld [vmem:[%s4122_s2 + $0x38] sm:$0xff]  ;;  %v2642_v43 = vpack.c.bf16 %v164_v40, %v163_v37  ;;  %v134_v47 = vld [vmem:[%s4122_s2 + $0xc8] sm:$0xff] }
  0x43   :  { %2639 = vmatprep.subr.bf16.mxu1 %v2638_v30  ;;  %v147_v44 = vld [vmem:[%s4122_s2 + $0x130] sm:$0xff]  ;;  %v148_v45 = vld [vmem:[%s4122_s2 + $0x138] sm:$0xff]  ;;  %v165_v48 = vld [vmem:[%s4122_s2 + $0x1c0] sm:$0xff]  ;;  %v2612_v50 = vpack.c.bf16 %v116_v42, %v115_v41  ;;  %v2614_v52 = vpack.c.bf16 %v134_v47, %v133_v46 }
  0x44   :  { %v166_v49 = vld [vmem:[%s4122_s2 + $0x1c8] sm:$0xff]  ;;  %v2644_v51 = vpack.c.bf16 %v148_v45, %v147_v44  ;;  %v117_v53 = vld [vmem:[%s4122_s2 + $0x40] sm:$0xff]  ;;  %v135_v58 = vld [vmem:[%s4122_s2 + $0xd0] sm:$0xff] }
  0x45   :  { %2609 = vmatpush3.bf16.msra.mxu0 %v2608_v34  ;;  %v118_v54 = vld [vmem:[%s4122_s2 + $0x48] sm:$0xff]  ;;  %v149_v55 = vld [vmem:[%s4122_s2 + $0x140] sm:$0xff]  ;;  %v2646_v56 = vpack.c.bf16 %v166_v49, %v165_v48  ;;  %v136_v59 = vld [vmem:[%s4122_s2 + $0xd8] sm:$0xff]  ;;  %v3110_v48 = vmov 0.0|0.0   ;;  %v3112_v49 = vmov 0.0  }
  0x46   :  { %2641 = vmatpush3.bf16.msra.mxu1 %v2640_v38  ;;  %2611 = vmatprep.subr.bf16.mxu0 %v2610_v39  ;;  %v150_v57 = vld [vmem:[%s4122_s2 + $0x148] sm:$0xff]  ;;  %v167_v60 = vld [vmem:[%s4122_s2 + $0x1d0] sm:$0xff]  ;;  %v168_v61 = vld [vmem:[%s4122_s2 + $0x1d8] sm:$0xff]  ;;  %v2616_v62 = vpack.c.bf16 %v118_v54, %v117_v53  ;;  %v2618_v0 = vpack.c.bf16 %v136_v59, %v135_v58 }
  0x47   :  { %2643 = vmatprep.subr.bf16.mxu1 %v2642_v43  ;;  %v2648_v63 = vpack.c.bf16 %v150_v57, %v149_v55  ;;  %v119_v1 = vld [vmem:[%s4122_s2 + $0x50] sm:$0xff]  ;;  %v120_v2 = vld [vmem:[%s4122_s2 + $0x58] sm:$0xff]  ;;  %v2650_v4 = vpack.c.bf16 %v168_v61, %v167_v60  ;;  %v137_v6 = vld [vmem:[%s4122_s2 + $0xe0] sm:$0xff] }
  0x48   :  { %v151_v3 = vld [vmem:[%s4122_s2 + $0x150] sm:$0xff]  ;;  %v152_v5 = vld [vmem:[%s4122_s2 + $0x158] sm:$0xff]  ;;  %v138_v7 = vld [vmem:[%s4122_s2 + $0xe8] sm:$0xff]  ;;  %v2620_v10 = vpack.c.bf16 %v120_v2, %v119_v1 }
  0x49   :  { %2613 = vmatpush3.bf16.msra.mxu0 %v2612_v50  ;;  %v169_v8 = vld [vmem:[%s4122_s2 + $0x1e0] sm:$0xff]  ;;  %v170_v9 = vld [vmem:[%s4122_s2 + $0x1e8] sm:$0xff]  ;;  %v2652_v13 = vpack.c.bf16 %v152_v5, %v151_v3  ;;  %v2622_v14 = vpack.c.bf16 %v138_v7, %v137_v6  ;;  %v95_v17 = vld [vmem:[%s4120_s0 + $0x18] sm:$0xff] }
  0x4a   :  { %2645 = vmatpush3.bf16.msra.mxu1 %v2644_v51  ;;  %2615 = vmatprep.subr.bf16.mxu0 %v2614_v52  ;;  %v121_v11 = vld [vmem:[%s4122_s2 + $0x60] sm:$0xff]  ;;  %v122_v12 = vld [vmem:[%s4122_s2 + $0x68] sm:$0xff]  ;;  %v2654_v18 = vpack.c.bf16 %v170_v9, %v169_v8  ;;  %v139_v20 = vld [vmem:[%s4122_s2 + $0xf0] sm:$0xff] }
  0x4b   :  { %2647 = vmatprep.subr.bf16.mxu1 %v2646_v56  ;;  %v153_v15 = vld [vmem:[%s4122_s2 + $0x160] sm:$0xff]  ;;  %v93_v16 = vld [vmem:[%s4120_s0 + $0x8] sm:$0xff]  ;;  %v140_v21 = vld [vmem:[%s4122_s2 + $0xf8] sm:$0xff]  ;;  %322 = vmatprep.mubr.f32.mxu1 %v95_v17  ;;  %v2624_v24 = vpack.c.bf16 %v122_v12, %v121_v11 }
  0x4c   :  { %v154_v19 = vld [vmem:[%s4122_s2 + $0x168] sm:$0xff]  ;;  %237 = vmatprep.mubr.f32.mxu0 %v93_v16  ;;  %v171_v22 = vld [vmem:[%s4122_s2 + $0x1f0] sm:$0xff]  ;;  %v172_v23 = vld [vmem:[%s4122_s2 + $0x1f8] sm:$0xff]  ;;  %v2626_v26 = vpack.c.bf16 %v140_v21, %v139_v20 }
  0x4d   :  { %2617 = vmatpush3.bf16.msra.mxu0 %v2616_v62  ;;  %v2656_v25 = vpack.c.bf16 %v154_v19, %v153_v15  ;;  %v123_v27 = vld [vmem:[%s4122_s2 + $0x70] sm:$0xff]  ;;  %v124_v28 = vld [vmem:[%s4122_s2 + $0x78] sm:$0xff]  ;;  %v2658_v29 = vpack.c.bf16 %v172_v23, %v171_v22  ;;  %v92_v34 = vld [vmem:[%s4120_s0] sm:$0xff] }
  0x4e   :  { %2649 = vmatpush3.bf16.msra.mxu1 %v2648_v63  ;;  %2619 = vmatprep.subr.bf16.mxu0 %v2618_v0  ;;  %v155_v30 = vld [vmem:[%s4122_s2 + $0x170] sm:$0xff]  ;;  %v156_v31 = vld [vmem:[%s4122_s2 + $0x178] sm:$0xff]  ;;  %v2628_v32 = vpack.c.bf16 %v124_v28, %v123_v27  ;;  %v97_v36 = vld [vmem:[%s4120_s0 + $0x28] sm:$0xff] }
  0x4f   :  { %2651 = vmatprep.subr.bf16.mxu1 %v2650_v4  ;;  %v2660_v33 = vpack.c.bf16 %v156_v31, %v155_v30  ;;  %v94_v35 = vld [vmem:[%s4120_s0 + $0x10] sm:$0xff]  ;;  %v99_v37 = vld [vmem:[%s4120_s0 + $0x38] sm:$0xff]  ;;  %v96_v38 = vld [vmem:[%s4120_s0 + $0x20] sm:$0xff] }
  0x50   :  { %v98_v39 = vld [vmem:[%s4120_s0 + $0x30] sm:$0xff]  ;;  %v101_v40 = vld [vmem:[%s4120_s0 + $0x48] sm:$0xff]  ;;  %v103_v41 = vld [vmem:[%s4120_s0 + $0x58] sm:$0xff] }
  0x51   :  { %2621 = vmatpush3.bf16.msra.mxu0 %v2620_v10  ;;  %v100_v42 = vld [vmem:[%s4120_s0 + $0x40] sm:$0xff]  ;;  %v102_v43 = vld [vmem:[%s4120_s0 + $0x50] sm:$0xff]  ;;  %v105_v44 = vld [vmem:[%s4120_s0 + $0x68] sm:$0xff] }
  0x52   :  { %2653 = vmatpush3.bf16.msra.mxu1 %v2652_v13  ;;  %2623 = vmatprep.subr.bf16.mxu0 %v2622_v14  ;;  %v107_v45 = vld [vmem:[%s4120_s0 + $0x78] sm:$0xff]  ;;  %v104_v46 = vld [vmem:[%s4120_s0 + $0x60] sm:$0xff]  ;;  %v106_v47 = vld [vmem:[%s4120_s0 + $0x70] sm:$0xff] }
  0x53   :  { %2655 = vmatprep.subr.bf16.mxu1 %v2654_v18  ;;  %v421_v50 = vld [vmem:[%s4131_s11] sm:$0xff]  ;;  %v422_v51 = vld [vmem:[%s4131_s11 + $0x8] sm:$0xff]  ;;  %v423_v52 = vld [vmem:[%s4131_s11 + $0x10] sm:$0xff] }
  0x54   :  { %v3492_v53 = vpack.c.bf16 %v422_v51, %v421_v50  ;;  %v424_v54 = vld [vmem:[%s4131_s11 + $0x18] sm:$0xff]  ;;  %v425_v56 = vld [vmem:[%s4131_s11 + $0x20] sm:$0xff]  ;;  %v426_v57 = vld [vmem:[%s4131_s11 + $0x28] sm:$0xff] }
  0x55   :  { %2625 = vmatpush3.bf16.msra.mxu0 %v2624_v24  ;;  %v3498_v55 = vpack.c.bf16 %v424_v54, %v423_v52  ;;  %v3508_v58 = vpack.c.bf16 %v426_v57, %v425_v56  ;;  %v427_v59 = vld [vmem:[%s4131_s11 + $0x30] sm:$0xff]  ;;  %v428_v60 = vld [vmem:[%s4131_s11 + $0x38] sm:$0xff]  ;;  %v429_v62 = vld [vmem:[%s4131_s11 + $0x40] sm:$0xff] }
  0x56   :  { %2657 = vmatpush3.bf16.msra.mxu1 %v2656_v25  ;;  %2627 = vmatprep.subr.bf16.mxu0 %v2626_v26  ;;  %v3518_v61 = vpack.c.bf16 %v428_v60, %v427_v59  ;;  %v430_v63 = vld [vmem:[%s4131_s11 + $0x48] sm:$0xff]  ;;  %v431_v1 = vld [vmem:[%s4131_s11 + $0x50] sm:$0xff]  ;;  %v432_v2 = vld [vmem:[%s4131_s11 + $0x58] sm:$0xff] }
  0x57   :  { %2659 = vmatprep.subr.bf16.mxu1 %v2658_v29  ;;  %v3528_v0 = vpack.c.bf16 %v430_v63, %v429_v62  ;;  %v3538_v3 = vpack.c.bf16 %v432_v2, %v431_v1  ;;  %v433_v4 = vld [vmem:[%s4131_s11 + $0x60] sm:$0xff]  ;;  %v434_v5 = vld [vmem:[%s4131_s11 + $0x68] sm:$0xff]  ;;  %v435_v7 = vld [vmem:[%s4131_s11 + $0x70] sm:$0xff] }
  0x58   :  { %v3548_v6 = vpack.c.bf16 %v434_v5, %v433_v4  ;;  %v436_v8 = vld [vmem:[%s4131_s11 + $0x78] sm:$0xff]  ;;  %v3598_v51 = vld [vmem:[%s4132_s12] sm:$0xff]  ;;  %v744_v54 = vld [vmem:[#allocation2 + $0x88] sm:$0xff] }
  0x59   :  { %2629 = vmatpush3.bf16.msra.mxu0 %v2628_v32  ;;  %v3558_v9 = vpack.c.bf16 %v436_v8, %v435_v7  ;;  %v743_v52 = vld [vmem:[#allocation2 + $0x80] sm:$0xff]  ;;  %v728_v59 = vld [vmem:[#allocation2 + $0x8] sm:$0xff]  ;;  %v745_v2 = vld [vmem:[#allocation2 + $0x90] sm:$0xff] }
  0x5a   :  { %2661 = vmatpush3.bf16.msra.mxu1 %v2660_v33  ;;  %2662 = vmatprep.subr.bf16.mxu0 %v3110_v48  ;;  %v727_v56 = vld [vmem:[#allocation2] sm:$0xff]  ;;  %v2698_v57 = vpack.c.bf16 %v744_v54, %v743_v52  ;;  %v760_v62 = vld [vmem:[#allocation2 + $0x108] sm:$0xff]  ;;  %v746_v4 = vld [vmem:[#allocation2 + $0x98] sm:$0xff] }
  0x5b   :  { %2674 = vmatprep.subr.bf16.mxu1 %v3110_v48  ;;  %v759_v60 = vld [vmem:[#allocation2 + $0x100] sm:$0xff]  ;;  %v2700_v63 = vpack.c.bf16 %v728_v59, %v727_v56  ;;  %v729_v5 = vld [vmem:[#allocation2 + $0x10] sm:$0xff]  ;;  %v2702_v7 = vpack.c.bf16 %v746_v4, %v745_v2  ;;  %v730_v8 = vld [vmem:[#allocation2 + $0x18] sm:$0xff] }
  0x5c   :  { %238 = vmatmul.mubr.f32.vlgmr.msra.gmra.mrb[0].mxu0 %v92_v34  ;;  %v3601_v1 = vpack.c.bf16 %v760_v62, %v759_v60  ;;  %v513_v54 = vld [vmem:[%s4125_s5] sm:$0x1]  ;;  %v761_v2 = vld [vmem:[#allocation2 + $0x110] sm:$0xff]  ;;  %v762_v4 = vld [vmem:[#allocation2 + $0x118] sm:$0xff] }
  0x5d   :  { %323 = vmatmul.mubr.f32.vlgmr.msra.gmra.mrb[0].mxu1 %v94_v35  ;;  %242 = vmatprep.mubr.f32.mxu0 %v97_v36  ;;  %v534_v59 = vld [vmem:[%s4126_s6] sm:$0x1] }
  0x5e   :  { %327 = vmatprep.mubr.f32.mxu1 %v99_v37  ;;  %2676 = vmatpush3.bf16.msra.mxu1 %v3492_v53 }
  0x5f   :  { %2677 = vmatprep.subr.bf16.mxu1 %v3110_v48 }
  0x60   :  { %243 = vmatmul.mubr.f32.gmra.mrb[2].mxu0 %v96_v38 }
  0x61   :  { %328 = vmatmul.mubr.f32.gmra.mrb[2].mxu1 %v98_v39  ;;  %247 = vmatprep.mubr.f32.mxu0 %v101_v40 }
  0x62   :  { %332 = vmatprep.mubr.f32.mxu1 %v103_v41  ;;  %2679 = vmatpush3.bf16.msra.mxu1 %v3498_v55 }
  0x63   :  { %2680 = vmatprep.subr.bf16.mxu1 %v3110_v48 }
  0x64   :  { %248 = vmatmul.mubr.f32.gmra.mrb[4].mxu0 %v100_v42 }
  0x65   :  { %333 = vmatmul.mubr.f32.gmra.mrb[4].mxu1 %v102_v43  ;;  %252 = vmatprep.mubr.f32.mxu0 %v105_v44 }
  0x66   :  { %337 = vmatprep.mubr.f32.mxu1 %v107_v45  ;;  %2682 = vmatpush3.bf16.msra.mxu1 %v3508_v58 }
  0x67   :  { %2683 = vmatprep.subr.bf16.mxu1 %v3110_v48 }
  0x68   :  { %253 = vmatmul.mubr.f32.gmra.mrb[6].mxu0 %v104_v46  ;;  %v3589_v46 = vld [vmem:[%s4121_s1] sm:$0x3] }
  0x69   :  { %338 = vmatmul.mubr.f32.gmra.mrb[6].mxu1 %v106_v47  ;;  %2458 = vmatprep.mubr.msk.f32.mxu0 %vm3111_vm0, %v3112_v49 }
  0x6a   :  { %2493 = vmatprep.mubr.msk.f32.mxu1 %vm3111_vm0, %v3112_v49  ;;  %2685 = vmatpush3.bf16.msra.mxu1 %v3518_v61 }
  0x6b   :  { %2686 = vmatprep.subr.bf16.mxu1 %v3110_v48 }
  0x6e   :  { %2688 = vmatpush3.bf16.msra.mxu1 %v3528_v0 }
  0x6f   :  { %2689 = vmatprep.subr.bf16.mxu1 %v3110_v48 }
  0x72   :  { %2691 = vmatpush3.bf16.msra.mxu1 %v3538_v3 }
  0x73   :  { %2692 = vmatprep.subr.bf16.mxu1 %v3110_v48 }
  0x76   :  { %2694 = vmatpush3.bf16.msra.mxu1 %v3548_v6 }
  0x77   :  { %2695 = vmatprep.subr.bf16.mxu1 %v3110_v48 }
  0x7a   :  { %2697 = vmatpush3.bf16.msra.mxu1 %v3558_v9 }
  0x7b   :  { %2496 = vmatprep.subr.mxu1 %v3112_v49 }
 0x12f   :  { %v2196_v10 = vpop.f32.mrb[0].mxu0 }
 0x130   :  { %v2240_v11 = vpop.f32.mrb[0].mxu1  ;;  %v2197_v12 = vpop.f32.mrb[1].mxu0 }
 0x131   :  { %v2198_v13 = vadd.f32 %v2197_v12, %v2196_v10  ;;  %v2241_v14 = vpop.f32.mrb[1].mxu1  ;;  %v2704_v10 = vpack.c.bf16 %v730_v8, %v729_v5  ;;  %v748_v12 = vld [vmem:[#allocation2 + $0xa8] sm:$0xff] }
 0x132   :  { %v2242_v15 = vadd.f32 %v2241_v14, %v2240_v11  ;;  %v747_v11 = vld [vmem:[#allocation2 + $0xa0] sm:$0xff] }
 0x133   :  { %v2199_v16 = vpop.f32.mrb[2].mxu0  ;;  %v2706_v14 = vpack.c.bf16 %v748_v12, %v747_v11  ;;  %v764_v11 = vld [vmem:[#allocation2 + $0x128] sm:$0xff] }
 0x134   :  { %v3563_v17 = vadd.f32 %v2242_v15, %v2198_v13  ;;  %v2243_v18 = vpop.f32.mrb[2].mxu1  ;;  %v2200_v19 = vpop.f32.mrb[3].mxu0  ;;  %v731_v13 = vld [vmem:[#allocation2 + $0x20] sm:$0xff]  ;;  %v732_v15 = vld [vmem:[#allocation2 + $0x28] sm:$0xff] }
 0x135   :  { %v2201_v20 = vadd.f32 %v2200_v19, %v2199_v16  ;;  %v2244_v21 = vpop.f32.mrb[3].mxu1  ;;  %v2708_v16 = vpack.c.bf16 %v732_v15, %v731_v13  ;;  %v750_v19 = vld [vmem:[#allocation2 + $0xb8] sm:$0xff]  ;;  %v765_v13 = vld [vmem:[#allocation2 + $0x130] sm:$0xff] }
 0x136   :  { %v2245_v22 = vadd.f32 %v2244_v21, %v2243_v18  ;;  %v343_v41 = vmul.f32 %v3563_v17, %v3563_v17  ;;  %v749_v18 = vld [vmem:[#allocation2 + $0xb0] sm:$0xff] }
 0x137   :  { %v2202_v23 = vpop.f32.mrb[4].mxu0  ;;  %v2710_v21 = vpack.c.bf16 %v750_v19, %v749_v18  ;;  %v768_v18 = vld [vmem:[#allocation2 + $0x148] sm:$0xff] }
 0x138   :  { %v3565_v24 = vadd.f32 %v2245_v22, %v2201_v20  ;;  %v2246_v25 = vpop.f32.mrb[4].mxu1  ;;  %v2203_v26 = vpop.f32.mrb[5].mxu0  ;;  %v733_v20 = vld [vmem:[#allocation2 + $0x30] sm:$0xff]  ;;  %v734_v22 = vld [vmem:[#allocation2 + $0x38] sm:$0xff] }
 0x139   :  { %v2204_v27 = vadd.f32 %v2203_v26, %v2202_v23  ;;  %v2247_v28 = vpop.f32.mrb[5].mxu1  ;;  %v2712_v23 = vpack.c.bf16 %v734_v22, %v733_v20  ;;  %v752_v26 = vld [vmem:[#allocation2 + $0xc8] sm:$0xff]  ;;  %v753_v20 = vld [vmem:[#allocation2 + $0xd0] sm:$0xff] }
 0x13a   :  { %v2663_v29 = vpack.c.bf16 %v3565_v24, %v3563_v17  ;;  %v2248_v30 = vadd.f32 %v2247_v28, %v2246_v25  ;;  %v344_v39 = vmul.f32 %v3565_v24, %v3565_v24  ;;  %v751_v25 = vld [vmem:[#allocation2 + $0xc0] sm:$0xff] }
 0x13b   :  { %v2205_v31 = vpop.f32.mrb[6].mxu0  ;;  %v2714_v28 = vpack.c.bf16 %v752_v26, %v751_v25  ;;  %v769_v25 = vld [vmem:[#allocation2 + $0x150] sm:$0xff] }
 0x13c   :  { %v3569_v32 = vadd.f32 %v2248_v30, %v2204_v27  ;;  %v2249_v33 = vpop.f32.mrb[6].mxu1  ;;  %2664 = vmatpush3.bf16.msra.mxu0 %v2663_v29  ;;  %v2206_v34 = vpop.f32.mrb[7].mxu0  ;;  %v2669_v43 = vpack.c.bf16 %v344_v39, %v343_v41  ;;  %v735_v27 = vld [vmem:[#allocation2 + $0x40] sm:$0xff]  ;;  %v736_v29 = vld [vmem:[#allocation2 + $0x48] sm:$0xff] }
 0x13d   :  { %v2207_v35 = vadd.f32 %v2206_v34, %v2205_v31  ;;  %v2250_v36 = vpop.f32.mrb[7].mxu1  ;;  %2665 = vmatprep.subr.bf16.mxu0 %v3110_v48  ;;  %v2716_v30 = vpack.c.bf16 %v736_v29, %v735_v27  ;;  %v770_v27 = vld [vmem:[#allocation2 + $0x158] sm:$0xff]  ;;  %v755_v29 = vld [vmem:[#allocation2 + $0xe0] sm:$0xff] }
 0x13e   :  { %v2251_v37 = vadd.f32 %v2250_v36, %v2249_v33  ;;  %v345_v44 = vmul.f32 %v3569_v32, %v3569_v32 }
 0x140   :  { %v3572_v38 = vadd.f32 %v2251_v37, %v2207_v35 }
 0x142   :  { %v2666_v40 = vpack.c.bf16 %v3572_v38, %v3569_v32  ;;  %v346_v42 = vmul.f32 %v3572_v38, %v3572_v38 }
 0x144   :  { %2667 = vmatpush3.bf16.msra.mxu0 %v2666_v40  ;;  %v2672_v45 = vpack.c.bf16 %v346_v42, %v345_v44  ;;  %v3113_v40 = vmov 1966171168   ;;  %v520_v42 = vlaneseq }
 0x145   :  { %2668 = vmatprep.subr.bf16.mxu0 %v3110_v48  ;;  %v518_v41 = vunpack.c.l.s4 %v3113_v40  ;;  %v757_v40 = vld [vmem:[#allocation2 + $0xf0] sm:$0xff] }
 0x146   :  { %v3604_v44 = vshrl.u32 %v520_v42, 7 }
 0x148   :  { %2670 = vmatpush3.bf16.msra.mxu0 %v2669_v43  ;;  %v519_v43 = vunpack.c.0.s8 %v518_v41  ;;  %v3618_v62 = vsub.s32 0, %v3604_v44  ;;  %v758_v41 = vld [vmem:[#allocation2 + $0xf8] sm:$0xff]  ;;  %vm705_vm5 = vcmp.lt.s32.totalorder %v3604_v44, 1  ;;  %vm718_vm6 = vcmp.lt.s32.totalorder %v3604_v44, 7 }
 0x149   :  { %2671 = vmatprep.subr.bf16.mxu0 %v3110_v48  ;;  %v2726_v42 = vpack.c.bf16 %v758_v41, %v757_v40 }
 0x14c   :  { %2673 = vmatpush3.bf16.msra.mxu0 %v2672_v45  ;;  %v3607_v45 = vsub.s32 %v519_v43, %v3604_v44  ;;  %v741_v43 = vld [vmem:[#allocation2 + $0x70] sm:$0xff] }
 0x14d   :  { %2699 = vmatprep.subr.bf16.mxu0 %v2698_v57 }
 0x14f   :  { %2459 = vmatmul.mubr.msk.f32.vlgmr.msra.gmra.mrb[8].mxu0 %vm347_vm1, %v3589_v46 }
 0x150   :  { %2701 = vmatpush3.bf16.msra.mxu0 %v2700_v63 }
 0x151   :  { %2703 = vmatprep.subr.bf16.mxu0 %v2702_v7  ;;  %v2734_v7 = vpack.c.bf16 %v762_v4, %v761_v2  ;;  %v642_v4 = vadd.s32 8, %v3604_v44 }
 0x154   :  { %2705 = vmatpush3.bf16.msra.mxu0 %v2704_v10  ;;  %v763_v10 = vld [vmem:[#allocation2 + $0x120] sm:$0xff] }
 0x155   :  { %2707 = vmatprep.subr.bf16.mxu0 %v2706_v14  ;;  %v2738_v12 = vpack.c.bf16 %v764_v11, %v763_v10  ;;  %v766_v14 = vld [vmem:[#allocation2 + $0x138] sm:$0xff]  ;;  %v649_v11 = vand.u32 15, %v3604_v44 }
 0x156   :  { %v2742_v15 = vpack.c.bf16 %v766_v14, %v765_v13 }
 0x157   :  { %vm3638_vm4 = vcmp.ge.s32.totalorder %v649_v11, 1 }
 0x158   :  { %2709 = vmatpush3.bf16.msra.mxu0 %v2708_v16  ;;  %v767_v16 = vld [vmem:[#allocation2 + $0x140] sm:$0xff] }
 0x159   :  { %2711 = vmatprep.subr.bf16.mxu0 %v2710_v21  ;;  %v2746_v19 = vpack.c.bf16 %v768_v18, %v767_v16  ;;  %v754_v21 = vld [vmem:[#allocation2 + $0xd8] sm:$0xff]  ;;  %v656_v16 = vand.u32 15, %v642_v4  ;;  %v644_v18 = vadd.s32 24, %v3604_v44 }
 0x15a   :  { %v2718_v22 = vpack.c.bf16 %v754_v21, %v753_v20 }
 0x15b   :  { %vm698_vm7 = vcmp.lt.s32.totalorder %v656_v16, 15  ;;  %v1224_v16 = vld [vmem:[#allocation5 + $0x28] sm:$0xff] }
 0x15c   :  { %2713 = vmatpush3.bf16.msra.mxu0 %v2712_v23  ;;  %v737_v23 = vld [vmem:[#allocation2 + $0x50] sm:$0xff] }
 0x15d   :  { %2715 = vmatprep.subr.bf16.mxu0 %v2714_v28  ;;  %v2750_v28 = vpack.c.bf16 %v770_v27, %v769_v25  ;;  %v670_v27 = vand.u32 15, %v644_v18 }
 0x15f   :  { %vm700_vm8 = vcmp.lt.s32.totalorder %v670_v27, 15  ;;  %v1237_v27 = vld [vmem:[#allocation5 + $0x90] sm:$0xff] }
 0x160   :  { %2717 = vmatpush3.bf16.msra.mxu0 %v2716_v30  ;;  %v756_v30 = vld [vmem:[#allocation2 + $0xe8] sm:$0xff] }
 0x161   :  { %2719 = vmatprep.subr.bf16.mxu0 %v2718_v22 }
 0x222   :  { %v417_v47 = vpop.f32.mrb[8].mxu0 }
 0x223   :  { %v2460_v50 = vpop.f32.mrb[9].mxu0  ;;  %2494 = vmatmul.mubr.f32.vlgmr.msra.gmra.mrb[8].mxu1 %v417_v47 }
 0x224   :  { %2498 = vmatprep.mubr.msk.f32.mxu1 %vm3111_vm0, %v3112_v49  ;;  %2497 = vmatpush3.msra.mxu1 %v3598_v51 }
 0x225   :  { %2731 = vmatprep.subr.bf16.mxu1 %v3601_v1 }
 0x2f6   :  { %v503_v31 = vpop.f32.mrb[8].mxu1 }
 0x2f7   :  { %v507_v33 = vmul.f32 0.001953125, %v503_v31  ;;  %v2495_v34 = vpop.f32.mrb[9].mxu1  ;;  %v2722_v31 = vpack.c.bf16 %v756_v30, %v755_v29 }
 0x2f8   :  { %v740_v34 = vld [vmem:[#allocation2 + $0x68] sm:$0xff] }
 0x2f9   :  { %v508_v35 = vmul.f32 %v507_v33, %v507_v33 }
 0x2fb   :  { %v510_v36 = vrot.slane %v508_v35, 7  ;;  %v771_v35 = vld [vmem:[#allocation2 + $0x160] sm:$0xff] }
 0x2fd   :  { %v512_v37 = vsub.f32 %v507_v33, %v510_v36 }
 0x2ff   :  { %v514_v39 = vadd.f32 1e-05, %v512_v37  ;;  %v772_v37 = vld [vmem:[#allocation2 + $0x168] sm:$0xff] }
 0x301   :  { %2986 = vrsqrt.f32 %v514_v39  ;;  %v2754_v39 = vpack.c.bf16 %v772_v37, %v771_v35 }
 0x30b   :  { %v2987_v47 = vpop.eup %2986 }
 0x30c   :  { %v523_v50 = vrot.slane %v2987_v47, %v3607_v45  ;;  %v742_v47 = vld [vmem:[#allocation2 + $0x78] sm:$0xff] }
 0x30e   :  { %v524_v52 = vcombine.high %v523_v50, %v523_v50  ;;  %v773_v50 = vld [vmem:[#allocation2 + $0x170] sm:$0xff] }
 0x310   :  { %v531_v56 = vrot.slane %v524_v52, %v3607_v45  ;;  %v2728_v52 = vpack.c.bf16 %v742_v47, %v741_v43 }
 0x312   :  { %v533_v57 = vmul.f32 %v531_v56, %v513_v54  ;;  %v774_v54 = vld [vmem:[#allocation2 + $0x178] sm:$0xff] }
 0x313   :  { %v2758_v56 = vpack.c.bf16 %v774_v54, %v773_v50 }
 0x314   :  { %v535_v60 = vmul.f32 %v533_v57, %v507_v33  ;;  %v739_v33 = vld [vmem:[#allocation2 + $0x60] sm:$0xff] }
 0x315   :  { %v2724_v36 = vpack.c.bf16 %v740_v34, %v739_v33 }
 0x316   :  { %v536_v63 = vsub.f32 %v534_v59, %v535_v60 }
 0x318   :  { %v541_v5 = vrot.slane %v536_v63, %v3618_v62 }
 0x31a   :  { %v544_v8 = vsel %vm543_vm2, %v533_v57, %v541_v5  ;;  %v3627_v57 = vsub.s32 1, %v3604_v44 }
 0x31b   :  { %2499 = vmatmul.mubr.msk.f32.vlgmr.msra.gmra.mrb[10].mxu1 %vm546_vm3, %v544_v8 }
 0x31c   :  { %2733 = vmatpush3.bf16.msra.mxu1 %v3601_v1  ;;  %v738_v1 = vld [vmem:[#allocation2 + $0x58] sm:$0xff] }
 0x31d   :  { %2735 = vmatprep.subr.bf16.mxu1 %v2734_v7  ;;  %v2720_v26 = vpack.c.bf16 %v738_v1, %v737_v23 }
 0x31f   :  { %2721 = vmatpush3.bf16.msra.mxu0 %v2720_v26 }
 0x320   :  { %2737 = vmatpush3.bf16.msra.mxu1 %v2734_v7  ;;  %2723 = vmatprep.subr.bf16.mxu0 %v2722_v31 }
 0x321   :  { %2739 = vmatprep.subr.bf16.mxu1 %v2738_v12 }
 0x323   :  { %2725 = vmatpush3.bf16.msra.mxu0 %v2724_v36 }
 0x324   :  { %2741 = vmatpush3.bf16.msra.mxu1 %v2738_v12  ;;  %2727 = vmatprep.subr.bf16.mxu0 %v2726_v42 }
 0x325   :  { %2743 = vmatprep.subr.bf16.mxu1 %v2742_v15 }
 0x327   :  { %2729 = vmatpush3.bf16.msra.mxu0 %v2728_v52 }
 0x328   :  { %2745 = vmatpush3.bf16.msra.mxu1 %v2742_v15  ;;  %2762 = vmatprep.subr.bf16.mxu0 %v3110_v48 }
 0x329   :  { %2747 = vmatprep.subr.bf16.mxu1 %v2746_v19 }
 0x32c   :  { %2749 = vmatpush3.bf16.msra.mxu1 %v2746_v19 }
 0x32d   :  { %2751 = vmatprep.subr.bf16.mxu1 %v2750_v28 }
 0x330   :  { %2753 = vmatpush3.bf16.msra.mxu1 %v2750_v28 }
 0x331   :  { %2755 = vmatprep.subr.bf16.mxu1 %v2754_v39 }
 0x334   :  { %2757 = vmatpush3.bf16.msra.mxu1 %v2754_v39 }
 0x335   :  { %2759 = vmatprep.subr.bf16.mxu1 %v2758_v56 }
 0x338   :  { %2761 = vmatpush3.bf16.msra.mxu1 %v2758_v56 }
 0x339   :  { %2774 = vmatprep.subr.bf16.mxu1 %v3110_v48 }
 0x3ee   :  { %v616_v59 = vpop.f32.mrb[10].mxu1 }
 0x3ef   :  { %v623_v60 = vrot.slane %v616_v59, %v3618_v62  ;;  %v2500_v63 = vpop.f32.mrb[11].mxu1  ;;  %v631_v2 = vrot.slane %v616_v59, %v3627_v57 }
 0x3f1   :  { %v625_v5 = vmul.f32 %v623_v60, %v3565_v24  ;;  %v626_v7 = vmul.f32 %v623_v60, %v3569_v32  ;;  %v627_v8 = vmul.f32 %v623_v60, %v3572_v38  ;;  %v624_v10 = vmul.f32 %v623_v60, %v3563_v17  ;;  %v1230_v24 = vld [vmem:[#allocation5 + $0x58] sm:$0xff] }
 0x3f2   :  { %v643_v17 = vadd.s32 16, %v3604_v44 }
 0x3f3   :  { %v633_v12 = vadd.f32 %v631_v2, %v625_v5  ;;  %v634_v13 = vadd.f32 %v631_v2, %v626_v7  ;;  %v635_v14 = vadd.f32 %v631_v2, %v627_v8  ;;  %v632_v15 = vadd.f32 %v631_v2, %v624_v10 }
 0x3f4   :  { %v663_v34 = vand.u32 15, %v643_v17 }
 0x3f5   :  { %v637_v19 = vmax.f32 %v633_v12, 0.0  ;;  %v638_v20 = vmax.f32 %v634_v13, 0.0  ;;  %v639_v21 = vmax.f32 %v635_v14, 0.0  ;;  %v636_v22 = vmax.f32 %v632_v15, 0.0  ;;  %v1220_v15 = vld [vmem:[#allocation5 + $0x8] sm:$0xff] }
 0x3f6   :  { %vm695_vm9 = vcmp.ge.s32.totalorder %v663_v34, 1  ;;  %v2798_v18 = vpack.c.bf16 %v1224_v16, %v1220_v15  ;;  %v1245_v34 = vld [vmem:[#allocation5 + $0xd0] sm:$0xff]  ;;  %v1228_v16 = vld [vmem:[#allocation5 + $0x48] sm:$0xff] }
 0x3f7   :  { %v701_v32 = vrot.slane %v636_v22, 7  ;;  %839 = vmatprep.mubr.f32.mxu0 %v636_v22  ;;  %v704_v38 = vrot.slane %v639_v21, 7  ;;  %v714_v23 = vrot.slane %v636_v22, 1  ;;  %v715_v1 = vrot.slane %v637_v19, 1  ;;  %v1225_v22 = vld [vmem:[#allocation5 + $0x30] sm:$0xff] }
 0x3f8   :  { %v716_v25 = vrot.slane %v638_v20, 1  ;;  %v717_v26 = vrot.slane %v639_v21, 1  ;;  %v702_v30 = vrot.slane %v637_v19, 7  ;;  %v703_v36 = vrot.slane %v638_v20, 7 }
 0x3f9   :  { %v709_v28 = vsel %vm705_vm5, %v704_v38, %v701_v32  ;;  %v721_v29 = vsel %vm718_vm6, %v714_v23, %v715_v1 }
 0x3fa   :  { %2154 = vmatmul.mubr.msk.f32.vlgmr.msra.gmra.mrb[10].mxu0 %vm3638_vm4, %v709_v28  ;;  %2533 = vmatprep.mubr.f32.mxu1 %v721_v29  ;;  %v720_v31 = vsel %vm718_vm6, %v715_v1, %v716_v25  ;;  %v719_v33 = vsel %vm718_vm6, %v716_v25, %v717_v26  ;;  %v708_v35 = vsel %vm705_vm5, %v701_v32, %v702_v30  ;;  %v1229_v32 = vld [vmem:[#allocation5 + $0x50] sm:$0xff]  ;;  %v1238_v1 = vld [vmem:[#allocation5 + $0x98] sm:$0xff] }
 0x3fb   :  { %844 = vmatprep.mubr.f32.mxu0 %v637_v19  ;;  %2534 = vmatmul.mubr.msk.f32.vlgmr.msra.gmra.mrb[12].mxu1 %vm698_vm7, %v720_v31  ;;  %v722_v37 = vsel %vm718_vm6, %v717_v26, %v714_v23  ;;  %v706_v39 = vsel %vm705_vm5, %v703_v36, %v704_v38  ;;  %v1226_v19 = vld [vmem:[#allocation5 + $0x38] sm:$0xff]  ;;  %v1233_v38 = vld [vmem:[#allocation5 + $0x70] sm:$0xff] }
 0x3fc   :  { %2536 = vmatprep.mubr.f32.mxu1 %v719_v33  ;;  %2776 = vmatpush3.bf16.msra.mxu1 %v3492_v53  ;;  %v707_v53 = vsel %vm705_vm5, %v702_v30, %v703_v36  ;;  %v2836_v23 = vpack.c.bf16 %v1233_v38, %v1229_v32  ;;  %v1242_v25 = vld [vmem:[#allocation5 + $0xb8] sm:$0xff]  ;;  %v1241_v28 = vld [vmem:[#allocation5 + $0xb0] sm:$0xff]  ;;  %v1235_v38 = vld [vmem:[#allocation5 + $0x80] sm:$0xff] }
 0x3fd   :  { %2777 = vmatprep.subr.bf16.mxu1 %v3110_v48  ;;  %v2838_v26 = vpack.c.bf16 %v1242_v25, %v1238_v1  ;;  %v2840_v29 = vpack.c.bf16 %v1241_v28, %v1237_v27  ;;  %v1246_v30 = vld [vmem:[#allocation5 + $0xd8] sm:$0xff]  ;;  %v1244_v1 = vld [vmem:[#allocation5 + $0xc8] sm:$0xff]  ;;  %v1243_v28 = vld [vmem:[#allocation5 + $0xc0] sm:$0xff] }
 0x3fe   :  { %845 = vmatmul.mubr.f32.gmra.mrb[12].mxu0 %v708_v35  ;;  %v1250_v31 = vld [vmem:[#allocation5 + $0xf8] sm:$0xff]  ;;  %v1249_v35 = vld [vmem:[#allocation5 + $0xf0] sm:$0xff]  ;;  %v1248_v25 = vld [vmem:[#allocation5 + $0xe8] sm:$0xff] }
 0x3ff   :  { %849 = vmatprep.mubr.f32.mxu0 %v638_v20  ;;  %2537 = vmatmul.mubr.msk.f32.gmra.mrb[14].mxu1 %vm700_vm8, %v722_v37  ;;  %v2842_v33 = vpack.c.bf16 %v1250_v31, %v1246_v30  ;;  %v2844_v36 = vpack.c.bf16 %v1249_v35, %v1245_v34  ;;  %v1254_v37 = vld [vmem:[#allocation5 + $0x118] sm:$0xff]  ;;  %v2810_v27 = vpack.c.bf16 %v1248_v25, %v1244_v1  ;;  %v1252_v30 = vld [vmem:[#allocation5 + $0x108] sm:$0xff]  ;;  %v1251_v35 = vld [vmem:[#allocation5 + $0x100] sm:$0xff] }
 0x400   :  { %2779 = vmatpush3.bf16.msra.mxu1 %v3498_v55  ;;  %2590 = vmatprep.mubr.msk.f32.mxu1 %vm3111_vm0, %v3112_v49  ;;  %v1256_v31 = vld [vmem:[#allocation5 + $0x128] sm:$0xff]  ;;  %v1619_v25 = vld [vmem:[%s4133_s13] sm:$0xff] }
 0x401   :  { %2780 = vmatprep.subr.bf16.mxu1 %v3110_v48  ;;  %v2814_v34 = vpack.c.bf16 %v1256_v31, %v1252_v30  ;;  %v1636_v1 = vld [vmem:[%s4133_s13 + $0x88] sm:$0xff] }
 0x402   :  { %2155 = vmatmul.mubr.msk.f32.gmra.mrb[14].mxu0 %vm695_vm9, %v707_v53  ;;  %v1258_v53 = vld [vmem:[#allocation5 + $0x138] sm:$0xff] }
 0x403   :  { %854 = vmatprep.mubr.f32.mxu0 %v639_v21  ;;  %v1221_v21 = vld [vmem:[#allocation5 + $0x10] sm:$0xff] }
 0x404   :  { %2782 = vmatpush3.bf16.msra.mxu1 %v3508_v58 }
 0x405   :  { %2783 = vmatprep.subr.bf16.mxu1 %v3110_v48 }
 0x406   :  { %855 = vmatmul.mubr.f32.gmra.mrb[16].mxu0 %v706_v39  ;;  %v2846_v39 = vpack.c.bf16 %v1258_v53, %v1254_v37  ;;  %v1260_v37 = vld [vmem:[#allocation5 + $0x148] sm:$0xff] }
 0x407   :  { %2555 = vmatprep.mubr.msk.f32.mxu0 %vm3111_vm0, %v3112_v49  ;;  %v1264_v53 = vld [vmem:[#allocation5 + $0x168] sm:$0xff] }
 0x408   :  { %2785 = vmatpush3.bf16.msra.mxu1 %v3518_v61 }
 0x409   :  { %2786 = vmatprep.subr.bf16.mxu1 %v3110_v48 }
 0x40c   :  { %2788 = vmatpush3.bf16.msra.mxu1 %v3528_v0 }
 0x40d   :  { %2789 = vmatprep.subr.bf16.mxu1 %v3110_v48 }
 0x410   :  { %2791 = vmatpush3.bf16.msra.mxu1 %v3538_v3 }
 0x411   :  { %2792 = vmatprep.subr.bf16.mxu1 %v3110_v48 }
 0x414   :  { %2794 = vmatpush3.bf16.msra.mxu1 %v3548_v6 }
 0x415   :  { %2795 = vmatprep.subr.bf16.mxu1 %v3110_v48 }
 0x418   :  { %2797 = vmatpush3.bf16.msra.mxu1 %v3558_v9 }
 0x4cd   :  { %v2312_v55 = vpop.f32.mrb[10].mxu0 }
 0x4ce   :  { %v2313_v58 = vpop.f32.mrb[11].mxu0  ;;  %v2535_v44 = vpop.f32.mrb[12].mxu1 }
 0x4cf   :  { %v2314_v61 = vadd.f32 %v2313_v58, %v2312_v55  ;;  %v926_v40 = vpop.f32.mrb[13].mxu1  ;;  %v1253_v55 = vld [vmem:[#allocation5 + $0x110] sm:$0xff] }
 0x4d0   :  { %v1257_v58 = vld [vmem:[#allocation5 + $0x130] sm:$0xff] }
 0x4d1   :  { %v3682_v41 = vadd.f32 %v2314_v61, %v926_v40  ;;  %v2315_v0 = vpop.f32.mrb[12].mxu0  ;;  %v1262_v61 = vld [vmem:[#allocation5 + $0x158] sm:$0xff] }
 0x4d2   :  { %v2316_v42 = vpop.f32.mrb[13].mxu0  ;;  %v2538_v43 = vpop.f32.mrb[14].mxu1  ;;  %v1266_v40 = vld [vmem:[#allocation5 + $0x178] sm:$0xff] }
 0x4d3   :  { %v2317_v47 = vadd.f32 %v2316_v42, %v2315_v0  ;;  %v936_v3 = vpop.f32.mrb[15].mxu1  ;;  %v945_v7 = vmul.f32 %v3682_v41, %v3682_v41  ;;  %v2850_v0 = vpack.c.bf16 %v1266_v40, %v1262_v61  ;;  %v1261_v42 = vld [vmem:[#allocation5 + $0x150] sm:$0xff]  ;;  %v1268_v40 = vld [vmem:[#allocation5 + $0x188] sm:$0xff] }
 0x4d5   :  { %v3684_v50 = vadd.f32 %v2535_v44, %v2317_v47  ;;  %v2318_v52 = vpop.f32.mrb[14].mxu0  ;;  %v2848_v44 = vpack.c.bf16 %v1257_v58, %v1253_v55  ;;  %v2818_v55 = vpack.c.bf16 %v1264_v53, %v1260_v37  ;;  %v1259_v58 = vld [vmem:[#allocation5 + $0x140] sm:$0xff] }
 0x4d6   :  { %v2319_v6 = vpop.f32.mrb[15].mxu0 }
 0x4d7   :  { %v2763_v54 = vpack.c.bf16 %v3684_v50, %v3682_v41  ;;  %v2320_v9 = vadd.f32 %v2319_v6, %v2318_v52  ;;  %v946_v4 = vmul.f32 %v3684_v50, %v3684_v50 }
 0x4d9   :  { %v3688_v56 = vadd.f32 %v2320_v9, %v936_v3  ;;  %v2321_v59 = vpop.f32.mrb[16].mxu0  ;;  %2764 = vmatpush3.bf16.msra.mxu0 %v2763_v54  ;;  %v2769_v10 = vpack.c.bf16 %v946_v4, %v945_v7  ;;  %v1095_v7 = vld [vmem:[%s4127_s7] sm:$0x1] }
 0x4da   :  { %v2322_v60 = vpop.f32.mrb[17].mxu0  ;;  %2765 = vmatprep.subr.bf16.mxu0 %v3110_v48 }
 0x4db   :  { %v2323_v63 = vadd.f32 %v2322_v60, %v2321_v59  ;;  %v947_v11 = vmul.f32 %v3688_v56, %v3688_v56 }
 0x4dd   :  { %v3691_v2 = vadd.f32 %v2538_v43, %v2323_v63  ;;  %v1265_v43 = vld [vmem:[#allocation5 + $0x170] sm:$0xff] }
 0x4de   :  { %v2852_v47 = vpack.c.bf16 %v1265_v43, %v1261_v42  ;;  %v1270_v42 = vld [vmem:[#allocation5 + $0x198] sm:$0xff] }
 0x4df   :  { %v2766_v5 = vpack.c.bf16 %v3691_v2, %v3688_v56  ;;  %v948_v8 = vmul.f32 %v3691_v2, %v3691_v2 }
 0x4e1   :  { %2767 = vmatpush3.bf16.msra.mxu0 %v2766_v5  ;;  %v2772_v12 = vpack.c.bf16 %v948_v8, %v947_v11  ;;  %v1116_v11 = vld [vmem:[%s4128_s8] sm:$0x1] }
 0x4e2   :  { %2768 = vmatprep.subr.bf16.mxu0 %v3110_v48 }
 0x4e5   :  { %2770 = vmatpush3.bf16.msra.mxu0 %v2769_v10 }
 0x4e6   :  { %2771 = vmatprep.subr.bf16.mxu0 %v3110_v48  ;;  %v1222_v48 = vld [vmem:[#allocation5 + $0x18] sm:$0xff] }
 0x4e7   :  { %v2830_v20 = vpack.c.bf16 %v1226_v19, %v1222_v48  ;;  %v1232_v48 = vld [vmem:[#allocation5 + $0x68] sm:$0xff] }
 0x4e9   :  { %2773 = vmatpush3.bf16.msra.mxu0 %v2772_v12  ;;  %2831 = vmatprep.subr.bf16.mxu1 %v2830_v20  ;;  %v2802_v20 = vpack.c.bf16 %v1232_v48, %v1228_v16 }
 0x4ea   :  { %2593 = vmatprep.subr.mxu0 %v3112_v49 }
 0x4ec   :  { %2556 = vmatmul.mubr.msk.f32.vlgmr.msra.gmra.mrb[18].mxu0 %vm347_vm1, %v3589_v46  ;;  %v2832_v46 = vpack.c.bf16 %v1225_v22, %v1221_v21  ;;  %v1227_v21 = vld [vmem:[#allocation5 + $0x40] sm:$0xff] }
 0x4ed   :  { %2594 = vmatpush3.msra.mxu0 %v3598_v51  ;;  %2595 = vmatprep.mubr.msk.f32.mxu0 %vm3111_vm0, %v3112_v49  ;;  %v1234_v51 = vld [vmem:[#allocation5 + $0x78] sm:$0xff]  ;;  %v1231_v22 = vld [vmem:[#allocation5 + $0x60] sm:$0xff] }
 0x4ee   :  { %2799 = vmatprep.subr.bf16.mxu0 %v2798_v18  ;;  %v2834_v17 = vpack.c.bf16 %v1234_v51, %v1230_v24  ;;  %v1236_v24 = vld [vmem:[#allocation5 + $0x88] sm:$0xff] }
 0x4ef   :  { %v1240_v51 = vld [vmem:[#allocation5 + $0xa8] sm:$0xff] }
 0x4f0   :  { %v2806_v32 = vpack.c.bf16 %v1240_v51, %v1236_v24 }
 0x5bf   :  { %v1015_v13 = vpop.f32.mrb[18].mxu0 }
 0x5c0   :  { %v2557_v14 = vpop.f32.mrb[19].mxu0  ;;  %2591 = vmatmul.mubr.f32.vlgmr.msra.gmra.mrb[16].mxu1 %v1015_v13  ;;  %v1219_v13 = vld [vmem:[#allocation5] sm:$0xff] }
 0x5c1   :  { %1436 = vmatprep.mubr.f32.mxu1 %v3112_v49  ;;  %2833 = vmatpush1.bf16.msra.mxu1 %v2832_v46  ;;  %v1223_v14 = vld [vmem:[#allocation5 + $0x20] sm:$0xff] }
 0x5c2   :  { %2835 = vmatprep.subr.bf16.mxu1 %v2834_v17  ;;  %v2800_v19 = vpack.c.bf16 %v1223_v14, %v1219_v13  ;;  %v2804_v17 = vpack.c.bf16 %v1231_v22, %v1227_v21  ;;  %v1277_v14 = vld [vmem:[#allocation5 + $0x1d0] sm:$0xff] }
 0x5c5   :  { %2837 = vmatpush1.bf16.msra.mxu1 %v2836_v23  ;;  %v1239_v23 = vld [vmem:[#allocation5 + $0xa0] sm:$0xff] }
 0x5c6   :  { %2839 = vmatprep.subr.bf16.mxu1 %v2838_v26  ;;  %v2808_v26 = vpack.c.bf16 %v1239_v23, %v1235_v38 }
 0x5c9   :  { %2841 = vmatpush1.bf16.msra.mxu1 %v2840_v29  ;;  %v1247_v29 = vld [vmem:[#allocation5 + $0xe0] sm:$0xff] }
 0x5ca   :  { %2843 = vmatprep.subr.bf16.mxu1 %v2842_v33  ;;  %v2812_v33 = vpack.c.bf16 %v1247_v29, %v1243_v28  ;;  %v1637_v28 = vld [vmem:[%s4133_s13 + $0x90] sm:$0xff]  ;;  %v1638_v29 = vld [vmem:[%s4133_s13 + $0x98] sm:$0xff] }
 0x5cb   :  { %v2898_v31 = vpack.c.bf16 %v1638_v29, %v1637_v28 }
 0x5cd   :  { %2845 = vmatpush1.bf16.msra.mxu1 %v2844_v36  ;;  %v1255_v36 = vld [vmem:[#allocation5 + $0x120] sm:$0xff] }
 0x5ce   :  { %2847 = vmatprep.subr.bf16.mxu1 %v2846_v39  ;;  %v2816_v39 = vpack.c.bf16 %v1255_v36, %v1251_v35  ;;  %v1639_v35 = vld [vmem:[%s4133_s13 + $0xa0] sm:$0xff]  ;;  %v1640_v36 = vld [vmem:[%s4133_s13 + $0xa8] sm:$0xff] }
 0x5cf   :  { %v2902_v53 = vpack.c.bf16 %v1640_v36, %v1639_v35 }
 0x5d1   :  { %2849 = vmatpush1.bf16.msra.mxu1 %v2848_v44  ;;  %v1263_v44 = vld [vmem:[#allocation5 + $0x160] sm:$0xff] }
 0x5d2   :  { %2851 = vmatprep.subr.bf16.mxu1 %v2850_v0  ;;  %v2820_v61 = vpack.c.bf16 %v1263_v44, %v1259_v58  ;;  %v1272_v0 = vld [vmem:[#allocation5 + $0x1a8] sm:$0xff]  ;;  %v1641_v58 = vld [vmem:[%s4133_s13 + $0xb0] sm:$0xff]  ;;  %v1642_v44 = vld [vmem:[%s4133_s13 + $0xb8] sm:$0xff] }
 0x5d3   :  { %v2822_v43 = vpack.c.bf16 %v1272_v0, %v1268_v40  ;;  %v2906_v40 = vpack.c.bf16 %v1642_v44, %v1641_v58  ;;  %v1625_v0 = vld [vmem:[%s4133_s13 + $0x30] sm:$0xff] }
 0x5d5   :  { %2853 = vmatpush1.bf16.msra.mxu1 %v2852_v47  ;;  %v1274_v47 = vld [vmem:[#allocation5 + $0x1b8] sm:$0xff] }
 0x693   :  { %v1085_v3 = vpop.f32.mrb[16].mxu1 }
 0x694   :  { %v1089_v52 = vmul.f32 0.001953125, %v1085_v3  ;;  %v2592_v6 = vpop.f32.mrb[17].mxu1  ;;  %v1267_v3 = vld [vmem:[#allocation5 + $0x180] sm:$0xff] }
 0x695   :  { %v2854_v6 = vpack.c.bf16 %v1274_v47, %v1270_v42  ;;  %v1626_v42 = vld [vmem:[%s4133_s13 + $0x38] sm:$0xff]  ;;  %v1644_v47 = vld [vmem:[%s4133_s13 + $0xc8] sm:$0xff] }
 0x696   :  { %v1090_v54 = vmul.f32 %v1089_v52, %v1089_v52 }
 0x697   :  { %2855 = vmatprep.subr.bf16.mxu1 %v2854_v6  ;;  %v1627_v6 = vld [vmem:[%s4133_s13 + $0x40] sm:$0xff] }
 0x698   :  { %v1092_v9 = vrot.slane %v1090_v54, 7 }
 0x69a   :  { %v1094_v59 = vsub.f32 %v1089_v52, %v1092_v9  ;;  %v1269_v9 = vld [vmem:[#allocation5 + $0x190] sm:$0xff] }
 0x69c   :  { %v1096_v60 = vadd.f32 1e-05, %v1094_v59  ;;  %v1273_v59 = vld [vmem:[#allocation5 + $0x1b0] sm:$0xff] }
 0x69e   :  { %2988 = vrsqrt.f32 %v1096_v60  ;;  %v2856_v60 = vpack.c.bf16 %v1273_v59, %v1269_v9  ;;  %v1645_v9 = vld [vmem:[%s4133_s13 + $0xd0] sm:$0xff]  ;;  %v1646_v59 = vld [vmem:[%s4133_s13 + $0xd8] sm:$0xff] }
 0x6a0   :  { %2857 = vmatpush1.bf16.msra.mxu1 %v2856_v60 }
 0x6a8   :  { %v2989_v63 = vpop.eup %2988 }
 0x6a9   :  { %v1105_v4 = vrot.slane %v2989_v63, %v3607_v45  ;;  %v1276_v63 = vld [vmem:[#allocation5 + $0x1c8] sm:$0xff] }
 0x6ab   :  { %v1106_v5 = vcombine.high %v1105_v4, %v1105_v4  ;;  %v1280_v4 = vld [vmem:[#allocation5 + $0x1e8] sm:$0xff] }
 0x6ad   :  { %v1113_v8 = vrot.slane %v1106_v5, %v3607_v45  ;;  %v1278_v5 = vld [vmem:[#allocation5 + $0x1d8] sm:$0xff] }
 0x6af   :  { %v1115_v10 = vmul.f32 %v1113_v8, %v1095_v7  ;;  %v2826_v7 = vpack.c.bf16 %v1280_v4, %v1276_v63  ;;  %v1282_v8 = vld [vmem:[#allocation5 + $0x1f8] sm:$0xff]  ;;  %v2914_v63 = vpack.c.bf16 %v1646_v59, %v1645_v9  ;;  %v1629_v4 = vld [vmem:[%s4133_s13 + $0x50] sm:$0xff] }
 0x6b1   :  { %v1117_v12 = vmul.f32 %v1115_v10, %v1089_v52  ;;  %v1271_v52 = vld [vmem:[#allocation5 + $0x1a0] sm:$0xff] }
 0x6b2   :  { %v2824_v54 = vpack.c.bf16 %v1271_v52, %v1267_v3  ;;  %v2908_v3 = vpack.c.bf16 %v1626_v42, %v1625_v0 }
 0x6b3   :  { %v1118_v15 = vsub.f32 %v1116_v11, %v1117_v12  ;;  %v1279_v11 = vld [vmem:[#allocation5 + $0x1e0] sm:$0xff]  ;;  %v2858_v12 = vpack.c.bf16 %v1282_v8, %v1278_v5  ;;  %v1630_v5 = vld [vmem:[%s4133_s13 + $0x58] sm:$0xff]  ;;  %v1648_v8 = vld [vmem:[%s4133_s13 + $0xe8] sm:$0xff] }
 0x6b5   :  { %v1123_v18 = vrot.slane %v1118_v15, %v3618_v62  ;;  %v1281_v15 = vld [vmem:[#allocation5 + $0x1f0] sm:$0xff]  ;;  %2859 = vmatprep.subr.bf16.mxu1 %v2858_v12  ;;  %v1631_v12 = vld [vmem:[%s4133_s13 + $0x60] sm:$0xff] }
 0x6b6   :  { %v2860_v16 = vpack.c.bf16 %v1281_v15, %v1277_v14  ;;  %v1649_v14 = vld [vmem:[%s4133_s13 + $0xf0] sm:$0xff]  ;;  %v1650_v15 = vld [vmem:[%s4133_s13 + $0xf8] sm:$0xff] }
 0x6b7   :  { %v1125_v46 = vsel %vm543_vm2, %v1115_v10, %v1123_v18  ;;  %v1275_v10 = vld [vmem:[#allocation5 + $0x1c0] sm:$0xff] }
 0x6b8   :  { %2596 = vmatmul.mubr.msk.f32.vlgmr.msra.gmra.mrb[20].mxu0 %vm546_vm3, %v1125_v46  ;;  %v2828_v13 = vpack.c.bf16 %v1279_v11, %v1275_v10  ;;  %2861 = vmatpush1.bf16.msra.mxu1 %v2860_v16  ;;  %v2916_v10 = vpack.c.bf16 %v1630_v5, %v1629_v4  ;;  %v2992_v4 = vld [vmem:[%s4121_s1] sm:$0x3]  ;;  %s3075_s1 = scalar_lea.vmem %s2140_s27, 2048 }
 0x6b9   :  { %2801 = vmatpush1.bf16.msra.mxu0 %v2800_v19  ;;  %1347 = vmatprep.mubr.f32.mxu0 %v3112_v49  ;;  %v1667_v5 = vld [vmem:[%s4133_s13 + $0x180] sm:$0xff]  ;;  %p3076_p10 = scmp.ne.s32.totalorder %s2140_s27, %s3075_s1  ;;  %p3081_p12 = scmp.lt.s32.totalorder %s3075_s1, %s3075_s1 }
 0x6ba   :  { %2803 = vmatprep.subr.bf16.mxu0 %v2802_v20 }
 0x6bb   :  { %p3082_p13 = por %p3081_p12, %p3080_p11 }
 0x6bd   :  { %2805 = vmatpush1.bf16.msra.mxu0 %v2804_v17  ;;  %p3083_p0 = pnand %p3082_p13, %p3076_p10 }
 0x6be   :  { %2807 = vmatprep.subr.bf16.mxu0 %v2806_v32 }
 0x6c1   :  { %2809 = vmatpush1.bf16.msra.mxu0 %v2808_v26 }
 0x6c2   :  { %2811 = vmatprep.subr.bf16.mxu0 %v2810_v27  ;;  %v1620_v27 = vld [vmem:[%s4133_s13 + $0x8] sm:$0xff] }
 0x6c3   :  { %v2896_v30 = vpack.c.bf16 %v1620_v27, %v1619_v25 }
 0x6c5   :  { %2813 = vmatpush1.bf16.msra.mxu0 %v2812_v33  ;;  %v1621_v33 = vld [vmem:[%s4133_s13 + $0x10] sm:$0xff] }
 0x6c6   :  { %2815 = vmatprep.subr.bf16.mxu0 %v2814_v34  ;;  %v1622_v34 = vld [vmem:[%s4133_s13 + $0x18] sm:$0xff] }
 0x6c7   :  { %v2900_v37 = vpack.c.bf16 %v1622_v34, %v1621_v33 }
 0x6c9   :  { %2817 = vmatpush1.bf16.msra.mxu0 %v2816_v39  ;;  %v1623_v39 = vld [vmem:[%s4133_s13 + $0x20] sm:$0xff] }
 0x6ca   :  { %2819 = vmatprep.subr.bf16.mxu0 %v2818_v55  ;;  %v1624_v55 = vld [vmem:[%s4133_s13 + $0x28] sm:$0xff] }
 0x6cd   :  { %2821 = vmatpush1.bf16.msra.mxu0 %v2820_v61  ;;  %v2904_v61 = vpack.c.bf16 %v1624_v55, %v1623_v39 }
 0x6ce   :  { %2823 = vmatprep.subr.bf16.mxu0 %v2822_v43  ;;  %v1643_v43 = vld [vmem:[%s4133_s13 + $0xc0] sm:$0xff] }
 0x6cf   :  { %v2910_v52 = vpack.c.bf16 %v1644_v47, %v1643_v43 }
 0x6d1   :  { %2825 = vmatpush1.bf16.msra.mxu0 %v2824_v54  ;;  %v1628_v54 = vld [vmem:[%s4133_s13 + $0x48] sm:$0xff] }
 0x6d2   :  { %2827 = vmatprep.subr.bf16.mxu0 %v2826_v7  ;;  %v2912_v60 = vpack.c.bf16 %v1628_v54, %v1627_v6  ;;  %v1647_v7 = vld [vmem:[%s4133_s13 + $0xe0] sm:$0xff] }
 0x6d3   :  { %v2918_v11 = vpack.c.bf16 %v1648_v8, %v1647_v7  ;;  %v1668_v7 = vld [vmem:[%s4133_s13 + $0x188] sm:$0xff] }
 0x6d4   :  { %v2926_v8 = vpack.c.bf16 %v1668_v7, %v1667_v5  ;;  %v1681_v5 = vld [vmem:[%s4133_s13 + $0x1f0] sm:$0xff]  ;;  %v1682_v7 = vld [vmem:[%s4133_s13 + $0x1f8] sm:$0xff] }
 0x6d5   :  { %2829 = vmatpush1.bf16.msra.mxu0 %v2828_v13  ;;  %v1632_v13 = vld [vmem:[%s4133_s13 + $0x68] sm:$0xff] }
 0x6d6   :  { %v2920_v16 = vpack.c.bf16 %v1632_v13, %v1631_v12  ;;  %v1669_v12 = vld [vmem:[%s4133_s13 + $0x190] sm:$0xff]  ;;  %v1670_v13 = vld [vmem:[%s4133_s13 + $0x198] sm:$0xff] }
 0x78b   :  { %v1195_v48 = vpop.f32.mrb[20].mxu0 }
 0x78c   :  { %v1202_v18 = vrot.slane %v1195_v48, %v3618_v62  ;;  %v2597_v19 = vpop.f32.mrb[21].mxu0  ;;  %v1210_v21 = vrot.slane %v1195_v48, %v3627_v57  ;;  %v2922_v48 = vpack.c.bf16 %v1650_v15, %v1649_v14  ;;  %v2930_v15 = vpack.c.bf16 %v1670_v13, %v1669_v12  ;;  %v1666_v12 = vld [vmem:[%s4133_s13 + $0x178] sm:$0xff] }
 0x78e   :  { %v1203_v20 = vmul.f32 %v1202_v18, %v3682_v41  ;;  %v1204_v22 = vmul.f32 %v1202_v18, %v3684_v50  ;;  %v1205_v17 = vmul.f32 %v1202_v18, %v3688_v56  ;;  %v1206_v23 = vmul.f32 %v1202_v18, %v3691_v2  ;;  %v1635_v2 = vld [vmem:[%s4133_s13 + $0x80] sm:$0xff] }
 0x78f   :  { %v2894_v26 = vpack.c.bf16 %v1636_v1, %v1635_v2 }
 0x790   :  { %v1211_v46 = vadd.f32 %v1210_v21, %v1203_v20  ;;  %v1212_v51 = vadd.f32 %v1210_v21, %v1204_v22  ;;  %v1213_v38 = vadd.f32 %v1210_v21, %v1205_v17  ;;  %v1214_v50 = vadd.f32 %v1210_v21, %v1206_v23 }
 0x791   :  { %2895 = vmatprep.subr.bf16.mxu1 %v2894_v26 }
 0x792   :  { %v1215_v24 = vmax.f32 %v1211_v46, 0.0  ;;  %v1216_v32 = vmax.f32 %v1212_v51, 0.0  ;;  %v1217_v41 = vmax.f32 %v1213_v38, 0.0  ;;  %v1218_v56 = vmax.f32 %v1214_v50, 0.0 }
 0x794   :  { %1348 = vmatmul.mubr.f32.vlgmr.msra.gmra.mrb[22].mxu0 %v1215_v24  ;;  %1437 = vmatmul.mubr.f32.vlgmr.msra.gmra.mrb[18].mxu1 %v1215_v24 }
 0x795   :  { %1353 = vmatprep.mubr.f32.mxu0 %v3112_v49  ;;  %1442 = vmatprep.mubr.f32.mxu1 %v3112_v49 }
 0x796   :  { %2897 = vmatpush3.bf16.msra.mxu1 %v2896_v30 }
 0x797   :  { %2899 = vmatprep.subr.bf16.mxu1 %v2898_v31 }
 0x798   :  { %1354 = vmatmul.mubr.f32.gmra.mrb[24].mxu0 %v1216_v32  ;;  %1443 = vmatmul.mubr.f32.gmra.mrb[20].mxu1 %v1216_v32 }
 0x799   :  { %1359 = vmatprep.mubr.f32.mxu0 %v3112_v49  ;;  %1448 = vmatprep.mubr.f32.mxu1 %v3112_v49 }
 0x79a   :  { %2901 = vmatpush3.bf16.msra.mxu1 %v2900_v37 }
 0x79b   :  { %2903 = vmatprep.subr.bf16.mxu1 %v2902_v53 }
 0x79c   :  { %1360 = vmatmul.mubr.f32.gmra.mrb[26].mxu0 %v1217_v41  ;;  %1449 = vmatmul.mubr.f32.gmra.mrb[22].mxu1 %v1217_v41 }
 0x79d   :  { %1365 = vmatprep.mubr.f32.mxu0 %v3112_v49  ;;  %1454 = vmatprep.mubr.f32.mxu1 %v3112_v49 }
 0x79e   :  { %2905 = vmatpush3.bf16.msra.mxu1 %v2904_v61 }
 0x79f   :  { %2907 = vmatprep.subr.bf16.mxu1 %v2906_v40 }
 0x7a0   :  { %1366 = vmatmul.mubr.f32.gmra.mrb[28].mxu0 %v1218_v56  ;;  %1455 = vmatmul.mubr.f32.gmra.mrb[24].mxu1 %v1218_v56 }
 0x7a1   :  { %1541 = vmatprep.mubr.f32.mxu0 %v3112_v49 }
 0x7a2   :  { %2909 = vmatpush3.bf16.msra.mxu1 %v2908_v3 }
 0x7a3   :  { %2911 = vmatprep.subr.bf16.mxu1 %v2910_v52 }
 0x7a6   :  { %2913 = vmatpush3.bf16.msra.mxu1 %v2912_v60 }
 0x7a7   :  { %2915 = vmatprep.subr.bf16.mxu1 %v2914_v63 }
 0x7aa   :  { %2917 = vmatpush3.bf16.msra.mxu1 %v2916_v10  ;;  %v1651_v10 = vld [vmem:[%s4133_s13 + $0x100] sm:$0xff] }
 0x7ab   :  { %2919 = vmatprep.subr.bf16.mxu1 %v2918_v11  ;;  %v1652_v11 = vld [vmem:[%s4133_s13 + $0x108] sm:$0xff] }
 0x7ac   :  { %v2928_v14 = vpack.c.bf16 %v1652_v11, %v1651_v10  ;;  %v2954_v10 = vpack.c.bf16 %v1682_v7, %v1681_v5  ;;  %v1665_v11 = vld [vmem:[%s4133_s13 + $0x170] sm:$0xff] }
 0x7ad   :  { %v2956_v13 = vpack.c.bf16 %v1666_v12, %v1665_v11  ;;  %v1829_v12 = vld [vmem:[%s4129_s9] sm:$0x1] }
 0x7ae   :  { %2921 = vmatpush3.bf16.msra.mxu1 %v2920_v16  ;;  %v1653_v16 = vld [vmem:[%s4133_s13 + $0x110] sm:$0xff] }
 0x7af   :  { %2923 = vmatprep.subr.bf16.mxu1 %v2922_v48  ;;  %v1654_v48 = vld [vmem:[%s4133_s13 + $0x118] sm:$0xff] }
 0x867   :  { %v3827_v18 = vpop.f32.mrb[22].mxu0  ;;  %v3829_v19 = vpop.f32.mrb[18].mxu1 }
 0x868   :  { %v3831_v20 = vpop.f32.mrb[23].mxu0  ;;  %v3833_v21 = vpop.f32.mrb[19].mxu1  ;;  %v1461_v22 = vmul.f32 %v3827_v18, %v3827_v18  ;;  %v1463_v46 = vmul.f32 %v3829_v19, %v3829_v19 }
 0x869   :  { %v1462_v24 = vmul.f32 %v3831_v20, %v3831_v20  ;;  %v1464_v51 = vmul.f32 %v3833_v21, %v3833_v21 }
 0x86b   :  { %v3843_v17 = vpop.f32.mrb[24].mxu0  ;;  %v3845_v32 = vpop.f32.mrb[20].mxu1 }
 0x86c   :  { %v1465_v38 = vmul.f32 %v3843_v17, %v3843_v17  ;;  %v2864_v23 = vpack.c.bf16 %v3843_v17, %v3827_v18  ;;  %v1467_v41 = vmul.f32 %v3845_v32, %v3845_v32  ;;  %v2880_v50 = vpack.c.bf16 %v3845_v32, %v3829_v19  ;;  %v3855_v56 = vpop.f32.mrb[25].mxu0  ;;  %v3857_v2 = vpop.f32.mrb[21].mxu1 }
 0x86d   :  { %v1466_v1 = vmul.f32 %v3855_v56, %v3855_v56  ;;  %v2862_v25 = vpack.c.bf16 %v3855_v56, %v3831_v20  ;;  %v1468_v26 = vmul.f32 %v3857_v2, %v3857_v2  ;;  %v2878_v27 = vpack.c.bf16 %v3857_v2, %v3833_v21 }
 0x86e   :  { %v2872_v28 = vpack.c.bf16 %v1465_v38, %v1461_v22  ;;  %v2888_v29 = vpack.c.bf16 %v1467_v41, %v1463_v46  ;;  %v1671_v22 = vld [vmem:[%s4133_s13 + $0x1a0] sm:$0xff]  ;;  %v1672_v46 = vld [vmem:[%s4133_s13 + $0x1a8] sm:$0xff]  ;;  %v1673_v41 = vld [vmem:[%s4133_s13 + $0x1b0] sm:$0xff] }
 0x86f   :  { %v3867_v30 = vpop.f32.mrb[26].mxu0  ;;  %v3869_v31 = vpop.f32.mrb[22].mxu1  ;;  %2863 = vmatprep.subr.bf16.mxu0 %v2862_v25  ;;  %v2870_v33 = vpack.c.bf16 %v1466_v1, %v1462_v24  ;;  %v2886_v34 = vpack.c.bf16 %v1468_v26, %v1464_v51  ;;  %v2932_v24 = vpack.c.bf16 %v1654_v48, %v1653_v16  ;;  %v2934_v51 = vpack.c.bf16 %v1672_v46, %v1671_v22  ;;  %v1655_v38 = vld [vmem:[%s4133_s13 + $0x120] sm:$0xff]  ;;  %v1633_v26 = vld [vmem:[%s4133_s13 + $0x70] sm:$0xff]  ;;  %v1861_v22 = vld [vmem:[#allocation7 + $0x8] sm:$0xff] }
 0x870   :  { %v3871_v35 = vpop.f32.mrb[27].mxu0  ;;  %v3873_v36 = vpop.f32.mrb[23].mxu1  ;;  %2865 = vmatpush1.bf16.msra.mxu0 %v2864_v23  ;;  %v1469_v37 = vmul.f32 %v3867_v30, %v3867_v30  ;;  %v1471_v53 = vmul.f32 %v3869_v31, %v3869_v31  ;;  %v1656_v23 = vld [vmem:[%s4133_s13 + $0x128] sm:$0xff] }
 0x871   :  { %v1470_v39 = vmul.f32 %v3871_v35, %v3871_v35  ;;  %v1472_v55 = vmul.f32 %v3873_v36, %v3873_v36  ;;  %v2936_v1 = vpack.c.bf16 %v1656_v23, %v1655_v38  ;;  %v1865_v46 = vld [vmem:[#allocation7 + $0x28] sm:$0xff]  ;;  %v1867_v38 = vld [vmem:[#allocation7 + $0x38] sm:$0xff]  ;;  %v1860_v23 = vld [vmem:[#allocation7] sm:$0xff] }
 0x873   :  { %v3883_v58 = vpop.f32.mrb[28].mxu0  ;;  %v3885_v44 = vpop.f32.mrb[24].mxu1 }
 0x874   :  { %v1473_v61 = vmul.f32 %v3883_v58, %v3883_v58  ;;  %v2868_v40 = vpack.c.bf16 %v3883_v58, %v3867_v30  ;;  %v1475_v0 = vmul.f32 %v3885_v44, %v3885_v44  ;;  %v2884_v42 = vpack.c.bf16 %v3885_v44, %v3869_v31  ;;  %v3895_v43 = vpop.f32.mrb[29].mxu0  ;;  %v3897_v47 = vpop.f32.mrb[25].mxu1 }
 0x875   :  { %v1474_v3 = vmul.f32 %v3895_v43, %v3895_v43  ;;  %v2866_v52 = vpack.c.bf16 %v3895_v43, %v3871_v35  ;;  %v1476_v6 = vmul.f32 %v3897_v47, %v3897_v47  ;;  %v2882_v54 = vpack.c.bf16 %v3897_v47, %v3873_v36 }
 0x876   :  { %v2876_v9 = vpack.c.bf16 %v1473_v61, %v1469_v37  ;;  %v2892_v59 = vpack.c.bf16 %v1475_v0, %v1471_v53  ;;  %v1675_v37 = vld [vmem:[%s4133_s13 + $0x1c0] sm:$0xff]  ;;  %v1676_v53 = vld [vmem:[%s4133_s13 + $0x1c8] sm:$0xff] }
 0x877   :  { %2867 = vmatprep.subr.bf16.mxu0 %v2866_v52  ;;  %v2874_v60 = vpack.c.bf16 %v1474_v3, %v1470_v39  ;;  %v2890_v63 = vpack.c.bf16 %v1476_v6, %v1472_v55  ;;  %v2942_v39 = vpack.c.bf16 %v1676_v53, %v1675_v37  ;;  %v1659_v55 = vld [vmem:[%s4133_s13 + $0x140] sm:$0xff]  ;;  %v1660_v61 = vld [vmem:[%s4133_s13 + $0x148] sm:$0xff]  ;;  %v1661_v3 = vld [vmem:[%s4133_s13 + $0x150] sm:$0xff] }
 0x878   :  { %2869 = vmatpush1.bf16.msra.mxu0 %v2868_v40  ;;  %v1677_v40 = vld [vmem:[%s4133_s13 + $0x1d0] sm:$0xff]  ;;  %v2944_v0 = vpack.c.bf16 %v1660_v61, %v1659_v55  ;;  %v1662_v52 = vld [vmem:[%s4133_s13 + $0x158] sm:$0xff]  ;;  %v1868_v37 = vld [vmem:[#allocation7 + $0x40] sm:$0xff] }
 0x879   :  { %2871 = vmatprep.subr.bf16.mxu0 %v2870_v33  ;;  %v1658_v33 = vld [vmem:[%s4133_s13 + $0x138] sm:$0xff]  ;;  %v1872_v53 = vld [vmem:[#allocation7 + $0x60] sm:$0xff]  ;;  %v1870_v61 = vld [vmem:[#allocation7 + $0x50] sm:$0xff] }
 0x87a   :  { %v2964_v55 = vpack.c.bf16 %v1872_v53, %v1868_v37 }
 0x87c   :  { %2873 = vmatpush1.bf16.msra.mxu0 %v2872_v28  ;;  %v1657_v28 = vld [vmem:[%s4133_s13 + $0x130] sm:$0xff] }
 0x87d   :  { %2875 = vmatprep.subr.bf16.mxu0 %v2874_v60 }
 0x880   :  { %2877 = vmatpush1.bf16.msra.mxu0 %v2876_v9  ;;  %v1680_v9 = vld [vmem:[%s4133_s13 + $0x1e8] sm:$0xff] }
 0x881   :  { %2879 = vmatprep.subr.bf16.mxu0 %v2878_v27  ;;  %v1634_v27 = vld [vmem:[%s4133_s13 + $0x78] sm:$0xff] }
 0x883   :  { %2160 = vmatmul.mubr.msk.f32.vlgmr.msra.gmra.mrb[30].mxu0 %vm347_vm1, %v2992_v4 }
 0x884   :  { %2881 = vmatpush1.bf16.msra.mxu0 %v2880_v50  ;;  %1612 = vmatprep.mubr.f32.mxu0 %v3112_v49  ;;  %v1674_v50 = vld [vmem:[%s4133_s13 + $0x1b8] sm:$0xff] }
 0x885   :  { %2883 = vmatprep.subr.bf16.mxu0 %v2882_v54  ;;  %v2938_v25 = vpack.c.bf16 %v1674_v50, %v1673_v41  ;;  %v1679_v54 = vld [vmem:[%s4133_s13 + $0x1e0] sm:$0xff] }
 0x886   :  { %v2950_v60 = vpack.c.bf16 %v1680_v9, %v1679_v54  ;;  %v1864_v50 = vld [vmem:[#allocation7 + $0x20] sm:$0xff] }
 0x888   :  { %2885 = vmatpush1.bf16.msra.mxu0 %v2884_v42  ;;  %v1678_v42 = vld [vmem:[%s4133_s13 + $0x1d8] sm:$0xff] }
 0x889   :  { %2887 = vmatprep.subr.bf16.mxu0 %v2886_v34  ;;  %v2940_v34 = vpack.c.bf16 %v1658_v33, %v1657_v28  ;;  %v2946_v6 = vpack.c.bf16 %v1678_v42, %v1677_v40  ;;  %v1869_v28 = vld [vmem:[#allocation7 + $0x48] sm:$0xff]  ;;  %v1871_v33 = vld [vmem:[#allocation7 + $0x58] sm:$0xff]  ;;  %v1874_v40 = vld [vmem:[#allocation7 + $0x70] sm:$0xff] }
 0x88c   :  { %2889 = vmatpush1.bf16.msra.mxu0 %v2888_v29  ;;  %v2924_v29 = vpack.c.bf16 %v1634_v27, %v1633_v26  ;;  %v2960_v26 = vpack.c.bf16 %v1864_v50, %v1860_v23 }
 0x88d   :  { %2891 = vmatprep.subr.bf16.mxu0 %v2890_v63  ;;  %v1663_v63 = vld [vmem:[%s4133_s13 + $0x160] sm:$0xff] }
 0x88e   :  { %2925 = vmatpush3.bf16.msra.mxu1 %v2924_v29  ;;  %v1873_v29 = vld [vmem:[#allocation7 + $0x68] sm:$0xff] }
 0x890   :  { %2893 = vmatpush1.bf16.msra.mxu0 %v2892_v59  ;;  %v2948_v59 = vpack.c.bf16 %v1662_v52, %v1661_v3 }
 0x891   :  { %2927 = vmatprep.subr.bf16.mxu0 %v2926_v8 }
 0x893   :  { %2161 = vmatmul.mubr.msk.f32.vlgmr.msra.gmra.mrb[32].mxu0 %vm347_vm1, %v2992_v4  ;;  %v1664_v4 = vld [vmem:[%s4133_s13 + $0x168] sm:$0xff] }
 0x894   :  { %2929 = vmatpush3.bf16.msra.mxu0 %v2928_v14  ;;  %v2952_v8 = vpack.c.bf16 %v1664_v4, %v1663_v63 }
 0x895   :  { %2931 = vmatprep.subr.bf16.mxu0 %v2930_v15 }
 0x898   :  { %2933 = vmatpush3.bf16.msra.mxu0 %v2932_v24  ;;  %v2958_v24 = vpack.c.bf16 %v1865_v46, %v1861_v22 }
 0x899   :  { %2935 = vmatprep.subr.bf16.mxu0 %v2934_v51  ;;  %v1863_v51 = vld [vmem:[#allocation7 + $0x18] sm:$0xff] }
 0x89a   :  { %v2966_v41 = vpack.c.bf16 %v1867_v38, %v1863_v51  ;;  %2959 = vmatprep.subr.bf16.mxu1 %v2958_v24 }
 0x89c   :  { %2937 = vmatpush3.bf16.msra.mxu0 %v2936_v1  ;;  %v1862_v1 = vld [vmem:[#allocation7 + $0x10] sm:$0xff] }
 0x89d   :  { %2939 = vmatprep.subr.bf16.mxu0 %v2938_v25  ;;  %v1866_v25 = vld [vmem:[#allocation7 + $0x30] sm:$0xff] }
 0x89e   :  { %v2968_v27 = vpack.c.bf16 %v1866_v25, %v1862_v1 }
 0x8a0   :  { %2941 = vmatpush3.bf16.msra.mxu0 %v2940_v34  ;;  %v1875_v34 = vld [vmem:[#allocation7 + $0x78] sm:$0xff] }
 0x8a1   :  { %2943 = vmatprep.subr.bf16.mxu0 %v2942_v39  ;;  %v2970_v39 = vpack.c.bf16 %v1875_v34, %v1871_v33 }
 0x8a4   :  { %2945 = vmatpush3.bf16.msra.mxu0 %v2944_v0  ;;  %v2972_v0 = vpack.c.bf16 %v1874_v40, %v1870_v61 }
 0x8a5   :  { %2947 = vmatprep.subr.bf16.mxu0 %v2946_v6 }
 0x8a8   :  { %2949 = vmatpush3.bf16.msra.mxu0 %v2948_v59 }
 0x8a9   :  { %2951 = vmatprep.subr.bf16.mxu0 %v2950_v60 }
 0x8ac   :  { %2953 = vmatpush3.bf16.msra.mxu0 %v2952_v8 }
 0x8ad   :  { %2955 = vmatprep.subr.bf16.mxu0 %v2954_v10 }
 0x8b0   :  { %2957 = vmatpush3.bf16.msra.mxu0 %v2956_v13 }
 0x8b1   :  { %2967 = vmatprep.subr.bf16.mxu0 %v2966_v41 }
 0x956   :  { %v1543_v14 = vpop.f32.mrb[30].mxu0 }
 0x957   :  { %v1545_v15 = vpop.f32.mrb[31].mxu0 }
 0x958   :  { %1747 = vmatprep.mubr.f32.mxu1 %v1545_v15  ;;  %v1850_v15 = vld [vmem:[%s4130_s10] sm:$0x1] }
 0x959   :  { %1748 = vmatmul.mubr.f32.vlgmr.msra.gmra.mrb[26].mxu1 %v1543_v14 }
 0x95a   :  { %1944 = vmatprep.mubr.f32.mxu1 %v3112_v49  ;;  %2961 = vmatpush1.bf16.msra.mxu1 %v2960_v26 }
 0x966   :  { %v1614_v16 = vpop.f32.mrb[32].mxu0 }
 0x967   :  { %v1616_v48 = vpop.f32.mrb[33].mxu0 }
 0x968   :  { %1817 = vmatprep.mubr.f32.mxu0 %v1616_v48 }
 0x969   :  { %1818 = vmatmul.mubr.f32.vlgmr.msra.gmra.mrb[34].mxu0 %v1614_v16 }
 0x96a   :  { %2015 = vmatprep.mubr.f32.mxu0 %v3112_v49  ;;  %2969 = vmatpush1.bf16.msra.mxu0 %v2968_v27  ;;  %v2962_v49 = vpack.c.bf16 %v1873_v29, %v1869_v28 }
 0x96b   :  { %2971 = vmatprep.subr.bf16.mxu0 %v2970_v39 }
 0x96c   :  { %2963 = vmatprep.subr.bf16.mxu1 %v2962_v49 }
 0x96d   :  { %2965 = vmatpush1.bf16.msra.mxu1 %v2964_v55 }
 0x96e   :  { %2973 = vmatpush1.bf16.msra.mxu0 %v2972_v0 }
 0xa2c   :  { %v2404_v42 = vpop.f32.mrb[26].mxu1 }
 0xa2d   :  { %v2405_v3 = vpop.f32.mrb[27].mxu1 }
 0xa2e   :  { %v2406_v52 = vadd.f32 %v2405_v3, %v2404_v42  ;;  %v2996_v3 = vld [vmem:[%s4120_s0 + $0x60] sm:$0xff] }
 0xa3c   :  { %v2439_v6 = vpop.f32.mrb[34].mxu0 }
 0xa3d   :  { %v2440_v54 = vpop.f32.mrb[35].mxu0 }
 0xa3e   :  { %v2441_v9 = vadd.f32 %v2440_v54, %v2439_v6  ;;  %v2997_v6 = vld [vmem:[%s4120_s0 + $0x10] sm:$0xff] }
 0xa40   :  { %v1820_v59 = vadd.f32 %v2441_v9, %v2406_v52  ;;  %v2998_v9 = vld [vmem:[%s4120_s0 + $0x30] sm:$0xff] }
 0xa42   :  { %v1823_v60 = vmul.f32 0.001953125, %v1820_v59 }
 0xa44   :  { %v1824_v63 = vmul.f32 %v1823_v60, %v1823_v60 }
 0xa46   :  { %v1826_v4 = vrot.slane %v1824_v63, 7 }
 0xa48   :  { %v1828_v5 = vsub.f32 %v1823_v60, %v1826_v4  ;;  %v3000_v4 = vld [vmem:[%s4120_s0 + $0x70] sm:$0xff] }
 0xa4a   :  { %v1830_v7 = vadd.f32 1e-05, %v1828_v5 }
 0xa4c   :  { %2990 = vrsqrt.f32 %v1830_v7 }
 0xa56   :  { %v2991_v8 = vpop.eup %2990 }
 0xa57   :  { %v1839_v10 = vrot.slane %v2991_v8, %v3607_v45 }
 0xa59   :  { %v1840_v11 = vcombine.high %v1839_v10, %v1839_v10 }
 0xa5b   :  { %v1847_v13 = vrot.slane %v1840_v11, %v3607_v45 }
 0xa5d   :  { %v1849_v14 = vmul.f32 %v1847_v13, %v1829_v12 }
 0xa5f   :  { %v1851_v16 = vmul.f32 %v1849_v14, %v1823_v60  ;;  %v2999_v60 = vld [vmem:[%s4120_s0 + $0x50] sm:$0xff] }
 0xa61   :  { %v1852_v48 = vsub.f32 %v1850_v15, %v1851_v16 }
 0xa63   :  { %v1857_v22 = vrot.slane %v1852_v48, %v3618_v62 }
 0xa65   :  { %v1859_v46 = vsel %vm543_vm2, %v1849_v14, %v1857_v22 }
 0xa66   :  { %2162 = vmatmul.mubr.msk.f32.vlgmr.msra.gmra.mrb[28].mxu1 %vm1876_vm10, %v1859_v46  ;;  %2163 = vmatmul.mubr.msk.f32.vlgmr.msra.gmra.mrb[36].mxu0 %vm1876_vm10, %v1859_v46 }
 0xb39   :  { %v1946_v24 = vpop.f32.mrb[28].mxu1  ;;  %v2017_v51 = vpop.f32.mrb[36].mxu0 }
 0xb3a   :  { %v2025_v38 = vrot.slane %v1946_v24, %v3618_v62  ;;  %v2057_v45 = vrot.slane %v1946_v24, %v3627_v57  ;;  %v2033_v23 = vrot.slane %v2017_v51, %v3618_v62  ;;  %v2065_v41 = vrot.slane %v2017_v51, %v3627_v57  ;;  %v1948_v50 = vpop.f32.mrb[29].mxu1  ;;  %v2019_v1 = vpop.f32.mrb[37].mxu0 }
 0xb3b   :  { %v2029_v25 = vrot.slane %v1948_v50, %v3618_v62  ;;  %v2061_v26 = vrot.slane %v1948_v50, %v3627_v57  ;;  %v2037_v27 = vrot.slane %v2019_v1, %v3618_v62  ;;  %v4035_v28 = vrot.slane %v2019_v1, %v3627_v57 }
 0xb3c   :  { %v2038_v29 = vmul.f32 %v2025_v38, %v3827_v18  ;;  %v2042_v33 = vmul.f32 %v2025_v38, %v3843_v17  ;;  %v2046_v49 = vmul.f32 %v2025_v38, %v3867_v30  ;;  %v2050_v34 = vmul.f32 %v2025_v38, %v3883_v58  ;;  %v2993_v30 = vld [vmem:[%s4120_s0] sm:$0xff] }
 0xb3d   :  { %v2040_v37 = vmul.f32 %v2033_v23, %v3829_v19  ;;  %v2044_v53 = vmul.f32 %v2033_v23, %v3845_v32  ;;  %v2048_v39 = vmul.f32 %v2033_v23, %v3869_v31  ;;  %v2052_v55 = vmul.f32 %v2033_v23, %v3885_v44  ;;  %v2994_v19 = vld [vmem:[%s4120_s0 + $0x20] sm:$0xff] }
 0xb3e   :  { %v2070_v62 = vadd.f32 %v2057_v45, %v2038_v29  ;;  %v2074_v61 = vadd.f32 %v2057_v45, %v2042_v33  ;;  %v2078_v57 = vadd.f32 %v2057_v45, %v2046_v49  ;;  %v2082_v40 = vadd.f32 %v2057_v45, %v2050_v34  ;;  %v2995_v31 = vld [vmem:[%s4120_s0 + $0x40] sm:$0xff]  ;;  %v3005_v29 = vld [vmem:[%s4120_s0 + $0x18] sm:$0xff] }
 0xb3f   :  { %v2072_v0 = vadd.f32 %v2065_v41, %v2040_v37  ;;  %v2076_v18 = vadd.f32 %v2065_v41, %v2044_v53  ;;  %v2080_v42 = vadd.f32 %v2065_v41, %v2048_v39  ;;  %v2084_v17 = vadd.f32 %v2065_v41, %v2052_v55  ;;  %v3006_v49 = vld [vmem:[%s4120_s0 + $0x38] sm:$0xff] }
 0xb40   :  { %v2086_v58 = vadd.f32 %v2993_v30, %v2070_v62  ;;  %v2090_v32 = vadd.f32 %v2994_v19, %v2074_v61  ;;  %v2094_v44 = vadd.f32 %v2995_v31, %v2078_v57  ;;  %v2098_v52 = vadd.f32 %v2996_v3, %v2082_v40  ;;  %v3007_v37 = vld [vmem:[%s4120_s0 + $0x58] sm:$0xff] }
 0xb41   :  { %v2088_v54 = vadd.f32 %v2997_v6, %v2072_v0  ;;  %v2092_v59 = vadd.f32 %v2998_v9, %v2076_v18  ;;  %v2096_v63 = vadd.f32 %v2999_v60, %v2080_v42  ;;  %v2100_v5 = vadd.f32 %v3000_v4, %v2084_v17  ;;  %v3008_v39 = vld [vmem:[%s4120_s0 + $0x78] sm:$0xff] }
 0xb42   :  { %v2102_v7 = vmax.f32 %v2086_v58, 0.0  ;;  %v2106_v8 = vmax.f32 %v2090_v32, 0.0  ;;  %v2110_v10 = vmax.f32 %v2094_v44, 0.0  ;;  %v2114_v11 = vmax.f32 %v2098_v52, 0.0 }
 0xb43   :  { %v2104_v12 = vmax.f32 %v2088_v54, 0.0  ;;  %v2108_v13 = vmax.f32 %v2092_v59, 0.0  ;;  %v2112_v14 = vmax.f32 %v2096_v63, 0.0  ;;  %v2116_v15 = vmax.f32 %v2100_v5, 0.0 }
 0xb44   :  { %2118 = vst [vmem:[#allocation8] sm:$0xff] %v2102_v7  ;;  %2122 = vst [vmem:[#allocation8 + $0x20] sm:$0xff] %v2106_v8  ;;  %v2039_v16 = vmul.f32 %v2029_v25, %v3831_v20  ;;  %v2043_v48 = vmul.f32 %v2029_v25, %v3855_v56  ;;  %v2047_v22 = vmul.f32 %v2029_v25, %v3871_v35 }
 0xb45   :  { %2126 = vst [vmem:[#allocation8 + $0x40] sm:$0xff] %v2110_v10  ;;  %2130 = vst [vmem:[#allocation8 + $0x60] sm:$0xff] %v2114_v11  ;;  %v2051_v46 = vmul.f32 %v2029_v25, %v3895_v43  ;;  %v2041_v24 = vmul.f32 %v2037_v27, %v3833_v21  ;;  %v2045_v51 = vmul.f32 %v2037_v27, %v3857_v2  ;;  %v3001_v21 = vld [vmem:[%s4120_s0 + $0x8] sm:$0xff] }
 0xb46   :  { %2120 = vst [vmem:[#allocation8 + $0x10] sm:$0xff] %v2104_v12  ;;  %2124 = vst [vmem:[#allocation8 + $0x30] sm:$0xff] %v2108_v13  ;;  %v2049_v38 = vmul.f32 %v2037_v27, %v3873_v36  ;;  %v2053_v45 = vmul.f32 %v2037_v27, %v3897_v47  ;;  %v2071_v23 = vadd.f32 %v2061_v26, %v2039_v16  ;;  %v3002_v36 = vld [vmem:[%s4120_s0 + $0x28] sm:$0xff] }
 0xb47   :  { %2128 = vst [vmem:[#allocation8 + $0x50] sm:$0xff] %v2112_v14  ;;  %2132 = vst [vmem:[#allocation8 + $0x70] sm:$0xff] %v2116_v15  ;;  %v2075_v20 = vadd.f32 %v2061_v26, %v2043_v48  ;;  %v2079_v41 = vadd.f32 %v2061_v26, %v2047_v22  ;;  %v2083_v56 = vadd.f32 %v2061_v26, %v2051_v46  ;;  %v3003_v25 = vld [vmem:[%s4120_s0 + $0x48] sm:$0xff] }
 0xb48   :  { %v2073_v35 = vadd.f32 %v4035_v28, %v2041_v24  ;;  %v2077_v43 = vadd.f32 %v4035_v28, %v2045_v51  ;;  %v2081_v50 = vadd.f32 %v4035_v28, %v2049_v38  ;;  %v2085_v1 = vadd.f32 %v4035_v28, %v2053_v45  ;;  %v3004_v27 = vld [vmem:[%s4120_s0 + $0x68] sm:$0xff] }
 0xb49   :  { %v2087_v2 = vadd.f32 %v3001_v21, %v2071_v23  ;;  %v2091_v47 = vadd.f32 %v3002_v36, %v2075_v20  ;;  %v2095_v26 = vadd.f32 %v3003_v25, %v2079_v41  ;;  %v2099_v28 = vadd.f32 %v3004_v27, %v2083_v56 }
 0xb4a   :  { %v2089_v33 = vadd.f32 %v3005_v29, %v2073_v35  ;;  %v2093_v34 = vadd.f32 %v3006_v49, %v2077_v43  ;;  %v2097_v53 = vadd.f32 %v3007_v37, %v2081_v50  ;;  %v2101_v55 = vadd.f32 %v3008_v39, %v2085_v1 }
 0xb4b   :  { %v2103_v62 = vmax.f32 %v2087_v2, 0.0  ;;  %v2107_v61 = vmax.f32 %v2091_v47, 0.0  ;;  %v2111_v57 = vmax.f32 %v2095_v26, 0.0  ;;  %v2115_v40 = vmax.f32 %v2099_v28, 0.0 }
 0xb4c   :  { %v2105_v0 = vmax.f32 %v2089_v33, 0.0  ;;  %v2109_v18 = vmax.f32 %v2093_v34, 0.0  ;;  %v2113_v42 = vmax.f32 %v2097_v53, 0.0  ;;  %v2117_v17 = vmax.f32 %v2101_v55, 0.0 }
 0xb4d   :  { %2119 = vst [vmem:[#allocation8 + $0x8] sm:$0xff] %v2103_v62  ;;  %2123 = vst [vmem:[#allocation8 + $0x28] sm:$0xff] %v2107_v61 }
 0xb4e   :  { %2127 = vst [vmem:[#allocation8 + $0x48] sm:$0xff] %v2111_v57  ;;  %2131 = vst [vmem:[#allocation8 + $0x68] sm:$0xff] %v2115_v40 }
 0xb4f   :  { %2121 = vst [vmem:[#allocation8 + $0x18] sm:$0xff] %v2105_v0  ;;  %2125 = vst [vmem:[#allocation8 + $0x38] sm:$0xff] %v2109_v18 }
 0xb50   :  { %2129 = vst [vmem:[#allocation8 + $0x58] sm:$0xff] %v2113_v42  ;;  %2133 = vst [vmem:[#allocation8 + $0x78] sm:$0xff] %v2117_v17 }
 0xb51   :  { %3086 = shalt.err (!%p3083_p0)
}
 0xb52   :  { %s3087_s16 = scalar_lea.hbm %s4135_s15, 2048 }
 0xb53   :  { %p3088_p1 = scmp.ne.s32.totalorder %s4135_s15, %s3087_s16  ;;  %p3091_p2 = scmp.lt.u32.totalorder %s3087_s16, %s4135_s15 }
 0xb55   :  { %p3093_p3 = pnand %p3091_p2, %p3088_p1 }
 0xb57   :  { %3096 = shalt.err (!%p3093_p3)
}
 0xb58   :  { %2145 = dma.vmem_to_hbm [thread:$0]  %s2140_s27, 2048, %s4135_s15, [#allocation4], %s4138_s3, %s4138_s3, %s3105_s29  }
 0xb59   :  { %3101 = dma.done.wait [#allocation4], 2048  }
 0xb5a   :  { %3102 = vsyncadd [#allocation4], 4294965248 }
 0xb5b   :  { %2149 = vsyncpa [#allocation3], 1 }
 0xb5c   :  { %2150 = vsyncpa [#allocation6], 1 }
 0xb5d   :  { %2151 = vsyncpa [#allocation4], 1 }

</bundles_post_ra>
